<compile_context>
chip_gen: v6e
topology: v6e:2x2x1
jax: 0.10.0
libtpu: 0.0.40
codegen_flags: <defaults>
</compile_context>

<pallas_src>
import jax
import jax.numpy as jnp
from jax.experimental import pallas as pl
from jax.experimental.pallas import tpu as pltpu

# ---------------- small shapes consistent with the module -------------------
N = 2            # batch
TX = 8           # text length
TEXT_DIMS = 128  # text_dims  (conv Cin)
STYLE_DIMS = 32  # style_dims (conv Cout == GRU hidden)


# ----------------------------- fused Pallas kernel ---------------------------
def _tpsenet_kernel(x_ref, cw_ref, wih_ref, whh_ref, fcw_ref, slab_ref, o_ref):
    # x:    (N, T, Cin)          raw text embedding (channels-last, no padding)
    # cw:   (3, Cin, H)          conv taps, BN scale already folded in
    # wih:  (H, 128+3H)          GRU input proj, fwd gates lanes [0:3H), bwd gates [128:128+3H)
    # whh:  (H, 3H)              forward-direction hidden weights
    # fcw:  (2H, H)              final linear
    # slab: (8, 256)             row0: bn_shift | row1: bih(fwd@0,bwd@128, r/z hidden bias folded)
    #                            row2: bhh_n fwd | row3: bhh_n bwd | row4: fc bias
    # o:    (N, H)
    n, t, cin = x_ref.shape
    h = whh_ref.shape[-1] // 3
    nt = n * t

    # tiny packed parameters: one DMA, tile-aligned slices
    shift = slab_ref[0:1, 0:h]                                     # (1, H)
    bih = slab_ref[1:2, 0:128 + 3 * h]                             # (1, 128+3H)
    bhh_n_f = jnp.broadcast_to(slab_ref[2:3, 0:h], (n, h))         # hoisted out of the loop
    bhh_n_b = slab_ref[3:4, 0:h]                                   # (1, H)
    fc_b = slab_ref[4:5, 0:h]                                      # (1, H)

    # ---- Conv1d(k=3, 'same', no bias) + folded BN + ReLU as 3 per-tap matmuls ----
    # time shift between taps = sublane roll + boundary mask (no padded buffer, no concat)
    x2 = x_ref[...].reshape(nt, cin)                               # (N*T, Cin), free reshape
    tpos = jax.lax.broadcasted_iota(jnp.int32, (nt, cin), 0) % t
    x_prev = jnp.where(tpos == 0, 0.0, pltpu.roll(x2, shift=1, axis=0))        # x[t-1]
    x_next = jnp.where(tpos == t - 1, 0.0, pltpu.roll(x2, shift=nt - 1, axis=0))  # x[t+1]
    conv = (jnp.dot(x_prev, cw_ref[0], preferred_element_type=jnp.float32)
            + jnp.dot(x2, cw_ref[1], preferred_element_type=jnp.float32)
            + jnp.dot(x_next, cw_ref[2], preferred_element_type=jnp.float32))  # (N*T, H)
    hc = jnp.maximum(conv + shift, 0.0)

    # ---- GRU input projection, both directions packed & lane-tile aligned ----
    gi_all = jnp.dot(hc, wih_ref[...], preferred_element_type=jnp.float32) + bih
    gi3 = gi_all.reshape(n, t, 128 + 3 * h)

    # ---- forward direction: only hprev @ Whh_f stays on the serial chain ----
    whh = whh_ref[...]
    hf = jnp.zeros((n, h), jnp.float32)
    for tt in range(t):                       # small static T -> unrolled
        gi = gi3[:, tt, 0:3 * h]              # (N, 3H), lane offset 0
        gh = jnp.dot(hf, whh, preferred_element_type=jnp.float32)
        r = jax.nn.sigmoid(gi[:, 0:h] + gh[:, 0:h])
        z = jax.nn.sigmoid(gi[:, h:2 * h] + gh[:, h:2 * h])
        c = jnp.tanh(gi[:, 2 * h:] + r * (gh[:, 2 * h:] + bhh_n_f))
        hf = (1.0 - z) * c + z * hf

    # ---- backward direction at the last timestep: h0 = 0 so Whh_b drops out ----
    gi_b = gi3[:, t - 1, 128:128 + 3 * h]     # (N, 3H), lane offset 128 (tile-aligned)
    r_b = jax.nn.sigmoid(gi_b[:, 0:h])
    z_b = jax.nn.sigmoid(gi_b[:, h:2 * h])
    c_b = jnp.tanh(gi_b[:, 2 * h:] + r_b * bhh_n_b)
    hb = (1.0 - z_b) * c_b

    # ---- fc(out[:, -1, :]) + tanh (split weight -> no lane concat) ----
    se = jnp.tanh(jnp.dot(hf, fcw_ref[0:h, :], preferred_element_type=jnp.float32)
                  + jnp.dot(hb, fcw_ref[h:2 * h, :], preferred_element_type=jnp.float32)
                  + fc_b)
    o_ref[...] = se


def tpsenet_forward(packed, text_embedding):
    """text_embedding: (N, Tx, text_dims) -> (N, 1, style_dims), like TPSENet.forward."""
    n, _, _ = text_embedding.shape
    h = STYLE_DIMS
    se = pl.pallas_call(
        _tpsenet_kernel,
        out_shape=jax.ShapeDtypeStruct((n, h), jnp.float32),
    )(text_embedding, packed["conv_w"], packed["wih"], packed["whh_f"],
      packed["fc_w"], packed["slab"])
    return se[:, None, :]


# ----------------------------- pure-JAX reference -----------------------------
def tpsenet_reference(raw, text_embedding):
    """Straightforward conv + FULL bidirectional GRU + fc, validates the kernel."""
    n, t, _ = text_embedding.shape
    h = STYLE_DIMS
    xp = jnp.pad(text_embedding, ((0, 0), (1, 1), (0, 0)))
    conv = sum(jnp.einsum("ntc,cd->ntd", xp[:, k:k + t, :], raw["conv_w"][k])
               for k in range(3))
    hc = jnp.maximum(conv * raw["bn_scale"] + raw["bn_shift"], 0.0)       # (N, T, H)

    def cell(x_t, hprev, wih, whh, bih, bhh):
        gi = x_t @ wih + bih
        gh = hprev @ whh + bhh
        r = jax.nn.sigmoid(gi[:, :h] + gh[:, :h])
        z = jax.nn.sigmoid(gi[:, h:2 * h] + gh[:, h:2 * h])
        c = jnp.tanh(gi[:, 2 * h:] + r * gh[:, 2 * h:])
        return (1.0 - z) * c + z * hprev

    hf = jnp.zeros((n, h), jnp.float32)
    for tt in range(t):
        hf = cell(hc[:, tt, :], hf, raw["wih_f"], raw["whh_f"], raw["bih_f"], raw["bhh_f"])
    hb = jnp.zeros((n, h), jnp.float32)
    out_b_last = None
    for tt in reversed(range(t)):
        hb = cell(hc[:, tt, :], hb, raw["wih_b"], raw["whh_b"], raw["bih_b"], raw["bhh_b"])
        if tt == t - 1:
            out_b_last = hb                              # backward output at last timestep
    last = jnp.concatenate([hf, out_b_last], axis=-1)    # gru out[:, -1, :]
    se = jnp.tanh(last @ raw["fc_w"] + raw["fc_b"])
    return se[:, None, :]


# ----------------------------- parameter init / packing -----------------------
def init_raw_params(key):
    keys = list(jax.random.split(key, 32))
    ki = iter(keys)

    def nrm(shape, scl=0.1):
        return scl * jax.random.normal(next(ki), shape, jnp.float32)

    h = STYLE_DIMS
    p = {}
    # conv weight stored as (K, Cin, Cout)  (PyTorch Conv1d stores (Cout, Cin, K))
    p["conv_w"] = nrm((3, TEXT_DIMS, h))
    # eval-mode BatchNorm
    gamma = 1.0 + nrm((1, h))
    beta = nrm((1, h))
    run_mean = nrm((1, h))
    run_var = 1.0 + jnp.abs(nrm((1, h)))
    scale = gamma / jnp.sqrt(run_var + 1e-5)
    p["bn_scale"] = scale
    p["bn_shift"] = beta - run_mean * scale
    # bidirectional GRU (weights transposed for x @ W; PyTorch gate order r, z, n)
    p["wih_f"] = nrm((h, 3 * h))
    p["wih_b"] = nrm((h, 3 * h))
    p["bih_f"] = nrm((1, 3 * h))
    p["bih_b"] = nrm((1, 3 * h))
    p["whh_f"] = nrm((h, 3 * h))
    p["whh_b"] = nrm((h, 3 * h))          # unused by out[:, -1] (backward h0 == 0)
    p["bhh_f"] = nrm((1, 3 * h))
    p["bhh_b"] = nrm((1, 3 * h))
    # fc
    p["fc_w"] = nrm((2 * h, h))
    p["fc_b"] = nrm((1, h))
    return p


def pack_params(raw):
    """One-time folding/packing so the dispatch path has zero extra XLA ops."""
    h = STYLE_DIMS
    p = {}
    # fold BN scale into the conv weight columns
    p["conv_w"] = raw["conv_w"] * raw["bn_scale"][None, :, :]            # (3, Cin, H)
    # GRU input projection: forward gates at lane 0, backward gates at lane 128
    wih = jnp.zeros((h, 128 + 3 * h), jnp.float32)
    wih = wih.at[:, 0:3 * h].set(raw["wih_f"])
    wih = wih.at[:, 128:128 + 3 * h].set(raw["wih_b"])
    p["wih"] = wih
    p["whh_f"] = raw["whh_f"]
    p["fc_w"] = raw["fc_w"]
    # fold r/z hidden biases into input biases (only the n-gate hidden bias must stay)
    bih_f = raw["bih_f"].at[:, :2 * h].add(raw["bhh_f"][:, :2 * h])
    bih_b = raw["bih_b"].at[:, :2 * h].add(raw["bhh_b"][:, :2 * h])
    # pack all tiny vectors into one lane-padded slab (single DMA)
    slab = jnp.zeros((8, 256), jnp.float32)
    slab = slab.at[0, 0:h].set(raw["bn_shift"][0])
    slab = slab.at[1, 0:3 * h].set(bih_f[0])
    slab = slab.at[1, 128:128 + 3 * h].set(bih_b[0])
    slab = slab.at[2, 0:h].set(raw["bhh_f"][0, 2 * h:])
    slab = slab.at[3, 0:h].set(raw["bhh_b"][0, 2 * h:])
    slab = slab.at[4, 0:h].set(raw["fc_b"][0])
    p["slab"] = slab
    return p


# ----------------------------------- main -------------------------------------
if __name__ == "__main__":
    root = jax.random.PRNGKey(0)
    kp, kx = jax.random.split(root)

    raw = init_raw_params(kp)
    packed = jax.tree_util.tree_map(jnp.asarray, pack_params(raw))
    text_embedding = jax.random.normal(kx, (N, TX, TEXT_DIMS), jnp.float32)

    se = jax.jit(tpsenet_forward)(packed, text_embedding)
    se = jax.block_until_ready(se)

    ref = jax.block_until_ready(tpsenet_reference(raw, text_embedding))

    assert se.shape == (N, 1, STYLE_DIMS)
    assert bool(jnp.all(jnp.isfinite(se)))
    max_err = float(jnp.max(jnp.abs(se - ref)))
    assert max_err < 5e-3, f"kernel vs reference mismatch: {max_err}"
    print("KERNEL_OK")
</pallas_src>

<mosaic_0001>
module attributes {stable_mosaic.version = 11 : i64} {
  func.func @_tpsenet_kernel(%arg0: memref<2x8x128xf32, #tpu.memory_space<vmem>>, %arg1: memref<3x128x32xf32, #tpu.memory_space<vmem>>, %arg2: memref<32x224xf32, #tpu.memory_space<vmem>>, %arg3: memref<32x96xf32, #tpu.memory_space<vmem>>, %arg4: memref<64x32xf32, #tpu.memory_space<vmem>>, %arg5: memref<8x256xf32, #tpu.memory_space<vmem>>, %arg6: memref<2x32xf32, #tpu.memory_space<vmem>>) attributes {dimension_semantics = [], scalar_prefetch = 0 : i64, scratch_operands = 0 : i64, tpu.core_type = #tpu.core_type<tc>} {
    %c0 = arith.constant 0 : index
    %c0_0 = arith.constant 0 : index
    %0 = vector.load %arg5[%c0, %c0_0] : memref<8x256xf32, #tpu.memory_space<vmem>>, vector<1x32xf32>
    %c1 = arith.constant 1 : index
    %c0_1 = arith.constant 0 : index
    %1 = vector.load %arg5[%c1, %c0_1] : memref<8x256xf32, #tpu.memory_space<vmem>>, vector<1x224xf32>
    %c2 = arith.constant 2 : index
    %c0_2 = arith.constant 0 : index
    %2 = vector.load %arg5[%c2, %c0_2] : memref<8x256xf32, #tpu.memory_space<vmem>>, vector<1x32xf32>
    %3 = vector.shape_cast %2 : vector<1x32xf32> to vector<1x32xf32>
    %4 = vector.broadcast %3 : vector<1x32xf32> to vector<2x32xf32>
    %c3 = arith.constant 3 : index
    %c0_3 = arith.constant 0 : index
    %5 = vector.load %arg5[%c3, %c0_3] : memref<8x256xf32, #tpu.memory_space<vmem>>, vector<1x32xf32>
    %c4 = arith.constant 4 : index
    %c0_4 = arith.constant 0 : index
    %6 = vector.load %arg5[%c4, %c0_4] : memref<8x256xf32, #tpu.memory_space<vmem>>, vector<1x32xf32>
    %c0_5 = arith.constant 0 : index
    %c0_6 = arith.constant 0 : index
    %c0_7 = arith.constant 0 : index
    %7 = vector.load %arg0[%c0_5, %c0_6, %c0_7] : memref<2x8x128xf32, #tpu.memory_space<vmem>>, vector<2x8x128xf32>
    %8 = vector.shape_cast %7 : vector<2x8x128xf32> to vector<16x128xf32>
    %9 = tpu.iota {dimensions = array<i32: 0>} : vector<16x128xi32>
    %c8_i32 = arith.constant 8 : i32
    %c0_i32 = arith.constant 0 : i32
    %10 = arith.cmpi eq, %c8_i32, %c0_i32 : i32
    %c1_i32 = arith.constant 1 : i32
    %11 = arith.select %10, %c1_i32, %c8_i32 : i32
    %12 = vector.broadcast %11 : i32 to vector<16x128xi32>
    %13 = arith.remsi %9, %12 : vector<16x128xi32>
    %c0_i32_8 = arith.constant 0 : i32
    %14 = vector.broadcast %c0_i32_8 : i32 to vector<16x128xi32>
    %15 = arith.cmpi ne, %13, %14 : vector<16x128xi32>
    %c0_i32_9 = arith.constant 0 : i32
    %16 = vector.broadcast %c0_i32_9 : i32 to vector<16x128xi32>
    %17 = arith.cmpi slt, %13, %16 : vector<16x128xi32>
    %c0_i32_10 = arith.constant 0 : i32
    %18 = arith.cmpi slt, %11, %c0_i32_10 : i32
    %19 = vector.broadcast %18 : i1 to vector<16x128xi1>
    %20 = vector.broadcast %19 : vector<16x128xi1> to vector<16x128xi1>
    %21 = arith.xori %17, %20 : vector<16x128xi1>
    %22 = arith.andi %21, %15 : vector<16x128xi1>
    %23 = vector.broadcast %11 : i32 to vector<16x128xi32>
    %24 = arith.addi %13, %23 : vector<16x128xi32>
    %25 = arith.select %22, %24, %13 : vector<16x128xi1>, vector<16x128xi32>
    %c0_i32_11 = arith.constant 0 : i32
    %26 = vector.broadcast %c0_i32_11 : i32 to vector<16x128xi32>
    %27 = arith.cmpi eq, %25, %26 : vector<16x128xi32>
    %c1_i32_12 = arith.constant 1 : i32
    %28 = tpu.dynamic_rotate %8 by %c1_i32_12 dim 0 : vector<16x128xf32>, i32 -> vector<16x128xf32>
    %cst = arith.constant 0.000000e+00 : f32
    %29 = vector.broadcast %cst : f32 to vector<16x128xf32>
    %30 = arith.select %27, %29, %28 : vector<16x128xi1>, vector<16x128xf32>
    %c7_i32 = arith.constant 7 : i32
    %31 = vector.broadcast %c7_i32 : i32 to vector<16x128xi32>
    %32 = arith.cmpi eq, %25, %31 : vector<16x128xi32>
    %c15_i32 = arith.constant 15 : i32
    %33 = tpu.dynamic_rotate %8 by %c15_i32 dim 0 : vector<16x128xf32>, i32 -> vector<16x128xf32>
    %cst_13 = arith.constant 0.000000e+00 : f32
    %34 = vector.broadcast %cst_13 : f32 to vector<16x128xf32>
    %35 = arith.select %32, %34, %33 : vector<16x128xi1>, vector<16x128xf32>
    %c0_14 = arith.constant 0 : index
    %c0_15 = arith.constant 0 : index
    %c0_16 = arith.constant 0 : index
    %36 = vector.load %arg1[%c0_14, %c0_15, %c0_16] : memref<3x128x32xf32, #tpu.memory_space<vmem>>, vector<1x128x32xf32>
    %37 = vector.shape_cast %36 : vector<1x128x32xf32> to vector<128x32xf32>
    %cst_17 = arith.constant dense<0.000000e+00> : vector<16x32xf32>
    %38 = tpu.matmul %30, %37, %cst_17 {dimension_numbers = #tpu.dot_dimension_numbers<[1], [0], [0], [1], [0, 0, 1, 1], [], []>} : vector<16x128xf32>, vector<128x32xf32>, vector<16x32xf32> -> vector<16x32xf32>
    %c1_18 = arith.constant 1 : index
    %c0_19 = arith.constant 0 : index
    %c0_20 = arith.constant 0 : index
    %39 = vector.load %arg1[%c1_18, %c0_19, %c0_20] : memref<3x128x32xf32, #tpu.memory_space<vmem>>, vector<1x128x32xf32>
    %40 = vector.shape_cast %39 : vector<1x128x32xf32> to vector<128x32xf32>
    %cst_21 = arith.constant dense<0.000000e+00> : vector<16x32xf32>
    %41 = tpu.matmul %8, %40, %cst_21 {dimension_numbers = #tpu.dot_dimension_numbers<[1], [0], [0], [1], [0, 0, 1, 1], [], []>} : vector<16x128xf32>, vector<128x32xf32>, vector<16x32xf32> -> vector<16x32xf32>
    %42 = arith.addf %38, %41 : vector<16x32xf32>
    %c2_22 = arith.constant 2 : index
    %c0_23 = arith.constant 0 : index
    %c0_24 = arith.constant 0 : index
    %43 = vector.load %arg1[%c2_22, %c0_23, %c0_24] : memref<3x128x32xf32, #tpu.memory_space<vmem>>, vector<1x128x32xf32>
    %44 = vector.shape_cast %43 : vector<1x128x32xf32> to vector<128x32xf32>
    %cst_25 = arith.constant dense<0.000000e+00> : vector<16x32xf32>
    %45 = tpu.matmul %35, %44, %cst_25 {dimension_numbers = #tpu.dot_dimension_numbers<[1], [0], [0], [1], [0, 0, 1, 1], [], []>} : vector<16x128xf32>, vector<128x32xf32>, vector<16x32xf32> -> vector<16x32xf32>
    %46 = arith.addf %42, %45 : vector<16x32xf32>
    %47 = vector.broadcast %0 : vector<1x32xf32> to vector<16x32xf32>
    %48 = arith.addf %46, %47 : vector<16x32xf32>
    %cst_26 = arith.constant 0.000000e+00 : f32
    %49 = vector.broadcast %cst_26 : f32 to vector<16x32xf32>
    %50 = arith.maximumf %48, %49 : vector<16x32xf32>
    %c0_27 = arith.constant 0 : index
    %c0_28 = arith.constant 0 : index
    %51 = vector.load %arg2[%c0_27, %c0_28] : memref<32x224xf32, #tpu.memory_space<vmem>>, vector<32x224xf32>
    %cst_29 = arith.constant dense<0.000000e+00> : vector<16x224xf32>
    %52 = tpu.matmul %50, %51, %cst_29 {dimension_numbers = #tpu.dot_dimension_numbers<[1], [0], [0], [1], [0, 0, 1, 1], [], []>} : vector<16x32xf32>, vector<32x224xf32>, vector<16x224xf32> -> vector<16x224xf32>
    %53 = vector.broadcast %1 : vector<1x224xf32> to vector<16x224xf32>
    %54 = arith.addf %52, %53 : vector<16x224xf32>
    %55 = vector.shape_cast %54 : vector<16x224xf32> to vector<2x8x224xf32>
    %c0_30 = arith.constant 0 : index
    %c0_31 = arith.constant 0 : index
    %56 = vector.load %arg3[%c0_30, %c0_31] : memref<32x96xf32, #tpu.memory_space<vmem>>, vector<32x96xf32>
    %cst_32 = arith.constant 0.000000e+00 : f32
    %57 = vector.broadcast %cst_32 : f32 to vector<2x32xf32>
    %58 = vector.extract_strided_slice %55 {offsets = [0, 0, 0], sizes = [2, 1, 96], strides = [1, 1, 1]} : vector<2x8x224xf32> to vector<2x1x96xf32>
    %59 = vector.shape_cast %58 : vector<2x1x96xf32> to vector<2x96xf32>
    %cst_33 = arith.constant dense<0.000000e+00> : vector<2x96xf32>
    %60 = tpu.matmul %57, %56, %cst_33 {dimension_numbers = #tpu.dot_dimension_numbers<[1], [0], [0], [1], [0, 0, 1, 1], [], []>} : vector<2x32xf32>, vector<32x96xf32>, vector<2x96xf32> -> vector<2x96xf32>
    %61 = vector.extract_strided_slice %59 {offsets = [0, 0], sizes = [2, 32], strides = [1, 1]} : vector<2x96xf32> to vector<2x32xf32>
    %62 = vector.extract_strided_slice %60 {offsets = [0, 0], sizes = [2, 32], strides = [1, 1]} : vector<2x96xf32> to vector<2x32xf32>
    %63 = arith.addf %61, %62 : vector<2x32xf32>
    %64 = arith.negf %63 : vector<2x32xf32>
    %65 = math.exp %64 : vector<2x32xf32>
    %cst_34 = arith.constant 1.000000e+00 : f32
    %66 = vector.broadcast %cst_34 : f32 to vector<2x32xf32>
    %67 = arith.addf %66, %65 : vector<2x32xf32>
    %68 = arith.divf %66, %67 : vector<2x32xf32>
    %69 = vector.extract_strided_slice %59 {offsets = [0, 32], sizes = [2, 32], strides = [1, 1]} : vector<2x96xf32> to vector<2x32xf32>
    %70 = vector.extract_strided_slice %60 {offsets = [0, 32], sizes = [2, 32], strides = [1, 1]} : vector<2x96xf32> to vector<2x32xf32>
    %71 = arith.addf %69, %70 : vector<2x32xf32>
    %72 = arith.negf %71 : vector<2x32xf32>
    %73 = math.exp %72 : vector<2x32xf32>
    %cst_35 = arith.constant 1.000000e+00 : f32
    %74 = vector.broadcast %cst_35 : f32 to vector<2x32xf32>
    %75 = arith.addf %74, %73 : vector<2x32xf32>
    %76 = arith.divf %74, %75 : vector<2x32xf32>
    %77 = vector.extract_strided_slice %59 {offsets = [0, 64], sizes = [2, 32], strides = [1, 1]} : vector<2x96xf32> to vector<2x32xf32>
    %78 = vector.extract_strided_slice %60 {offsets = [0, 64], sizes = [2, 32], strides = [1, 1]} : vector<2x96xf32> to vector<2x32xf32>
    %79 = arith.addf %78, %4 : vector<2x32xf32>
    %80 = arith.mulf %68, %79 : vector<2x32xf32>
    %81 = arith.addf %77, %80 : vector<2x32xf32>
    %82 = math.tanh %81 : vector<2x32xf32>
    %cst_36 = arith.constant 1.000000e+00 : f32
    %83 = vector.broadcast %cst_36 : f32 to vector<2x32xf32>
    %84 = arith.subf %83, %76 : vector<2x32xf32>
    %85 = arith.mulf %84, %82 : vector<2x32xf32>
    %86 = arith.mulf %76, %57 : vector<2x32xf32>
    %87 = arith.addf %85, %86 : vector<2x32xf32>
    %88 = vector.extract_strided_slice %55 {offsets = [0, 1, 0], sizes = [2, 1, 96], strides = [1, 1, 1]} : vector<2x8x224xf32> to vector<2x1x96xf32>
    %89 = vector.shape_cast %88 : vector<2x1x96xf32> to vector<2x96xf32>
    %cst_37 = arith.constant dense<0.000000e+00> : vector<2x96xf32>
    %90 = tpu.matmul %87, %56, %cst_37 {dimension_numbers = #tpu.dot_dimension_numbers<[1], [0], [0], [1], [0, 0, 1, 1], [], []>} : vector<2x32xf32>, vector<32x96xf32>, vector<2x96xf32> -> vector<2x96xf32>
    %91 = vector.extract_strided_slice %89 {offsets = [0, 0], sizes = [2, 32], strides = [1, 1]} : vector<2x96xf32> to vector<2x32xf32>
    %92 = vector.extract_strided_slice %90 {offsets = [0, 0], sizes = [2, 32], strides = [1, 1]} : vector<2x96xf32> to vector<2x32xf32>
    %93 = arith.addf %91, %92 : vector<2x32xf32>
    %94 = arith.negf %93 : vector<2x32xf32>
    %95 = math.exp %94 : vector<2x32xf32>
    %cst_38 = arith.constant 1.000000e+00 : f32
    %96 = vector.broadcast %cst_38 : f32 to vector<2x32xf32>
    %97 = arith.addf %96, %95 : vector<2x32xf32>
    %98 = arith.divf %96, %97 : vector<2x32xf32>
    %99 = vector.extract_strided_slice %89 {offsets = [0, 32], sizes = [2, 32], strides = [1, 1]} : vector<2x96xf32> to vector<2x32xf32>
    %100 = vector.extract_strided_slice %90 {offsets = [0, 32], sizes = [2, 32], strides = [1, 1]} : vector<2x96xf32> to vector<2x32xf32>
    %101 = arith.addf %99, %100 : vector<2x32xf32>
    %102 = arith.negf %101 : vector<2x32xf32>
    %103 = math.exp %102 : vector<2x32xf32>
    %cst_39 = arith.constant 1.000000e+00 : f32
    %104 = vector.broadcast %cst_39 : f32 to vector<2x32xf32>
    %105 = arith.addf %104, %103 : vector<2x32xf32>
    %106 = arith.divf %104, %105 : vector<2x32xf32>
    %107 = vector.extract_strided_slice %89 {offsets = [0, 64], sizes = [2, 32], strides = [1, 1]} : vector<2x96xf32> to vector<2x32xf32>
    %108 = vector.extract_strided_slice %90 {offsets = [0, 64], sizes = [2, 32], strides = [1, 1]} : vector<2x96xf32> to vector<2x32xf32>
    %109 = arith.addf %108, %4 : vector<2x32xf32>
    %110 = arith.mulf %98, %109 : vector<2x32xf32>
    %111 = arith.addf %107, %110 : vector<2x32xf32>
    %112 = math.tanh %111 : vector<2x32xf32>
    %cst_40 = arith.constant 1.000000e+00 : f32
    %113 = vector.broadcast %cst_40 : f32 to vector<2x32xf32>
    %114 = arith.subf %113, %106 : vector<2x32xf32>
    %115 = arith.mulf %114, %112 : vector<2x32xf32>
    %116 = arith.mulf %106, %87 : vector<2x32xf32>
    %117 = arith.addf %115, %116 : vector<2x32xf32>
    %118 = vector.extract_strided_slice %55 {offsets = [0, 2, 0], sizes = [2, 1, 96], strides = [1, 1, 1]} : vector<2x8x224xf32> to vector<2x1x96xf32>
    %119 = vector.shape_cast %118 : vector<2x1x96xf32> to vector<2x96xf32>
    %cst_41 = arith.constant dense<0.000000e+00> : vector<2x96xf32>
    %120 = tpu.matmul %117, %56, %cst_41 {dimension_numbers = #tpu.dot_dimension_numbers<[1], [0], [0], [1], [0, 0, 1, 1], [], []>} : vector<2x32xf32>, vector<32x96xf32>, vector<2x96xf32> -> vector<2x96xf32>
    %121 = vector.extract_strided_slice %119 {offsets = [0, 0], sizes = [2, 32], strides = [1, 1]} : vector<2x96xf32> to vector<2x32xf32>
    %122 = vector.extract_strided_slice %120 {offsets = [0, 0], sizes = [2, 32], strides = [1, 1]} : vector<2x96xf32> to vector<2x32xf32>
    %123 = arith.addf %121, %122 : vector<2x32xf32>
    %124 = arith.negf %123 : vector<2x32xf32>
    %125 = math.exp %124 : vector<2x32xf32>
    %cst_42 = arith.constant 1.000000e+00 : f32
    %126 = vector.broadcast %cst_42 : f32 to vector<2x32xf32>
    %127 = arith.addf %126, %125 : vector<2x32xf32>
    %128 = arith.divf %126, %127 : vector<2x32xf32>
    %129 = vector.extract_strided_slice %119 {offsets = [0, 32], sizes = [2, 32], strides = [1, 1]} : vector<2x96xf32> to vector<2x32xf32>
    %130 = vector.extract_strided_slice %120 {offsets = [0, 32], sizes = [2, 32], strides = [1, 1]} : vector<2x96xf32> to vector<2x32xf32>
    %131 = arith.addf %129, %130 : vector<2x32xf32>
    %132 = arith.negf %131 : vector<2x32xf32>
    %133 = math.exp %132 : vector<2x32xf32>
    %cst_43 = arith.constant 1.000000e+00 : f32
    %134 = vector.broadcast %cst_43 : f32 to vector<2x32xf32>
    %135 = arith.addf %134, %133 : vector<2x32xf32>
    %136 = arith.divf %134, %135 : vector<2x32xf32>
    %137 = vector.extract_strided_slice %119 {offsets = [0, 64], sizes = [2, 32], strides = [1, 1]} : vector<2x96xf32> to vector<2x32xf32>
    %138 = vector.extract_strided_slice %120 {offsets = [0, 64], sizes = [2, 32], strides = [1, 1]} : vector<2x96xf32> to vector<2x32xf32>
    %139 = arith.addf %138, %4 : vector<2x32xf32>
    %140 = arith.mulf %128, %139 : vector<2x32xf32>
    %141 = arith.addf %137, %140 : vector<2x32xf32>
    %142 = math.tanh %141 : vector<2x32xf32>
    %cst_44 = arith.constant 1.000000e+00 : f32
    %143 = vector.broadcast %cst_44 : f32 to vector<2x32xf32>
    %144 = arith.subf %143, %136 : vector<2x32xf32>
    %145 = arith.mulf %144, %142 : vector<2x32xf32>
    %146 = arith.mulf %136, %117 : vector<2x32xf32>
    %147 = arith.addf %145, %146 : vector<2x32xf32>
    %148 = vector.extract_strided_slice %55 {offsets = [0, 3, 0], sizes = [2, 1, 96], strides = [1, 1, 1]} : vector<2x8x224xf32> to vector<2x1x96xf32>
    %149 = vector.shape_cast %148 : vector<2x1x96xf32> to vector<2x96xf32>
    %cst_45 = arith.constant dense<0.000000e+00> : vector<2x96xf32>
    %150 = tpu.matmul %147, %56, %cst_45 {dimension_numbers = #tpu.dot_dimension_numbers<[1], [0], [0], [1], [0, 0, 1, 1], [], []>} : vector<2x32xf32>, vector<32x96xf32>, vector<2x96xf32> -> vector<2x96xf32>
    %151 = vector.extract_strided_slice %149 {offsets = [0, 0], sizes = [2, 32], strides = [1, 1]} : vector<2x96xf32> to vector<2x32xf32>
    %152 = vector.extract_strided_slice %150 {offsets = [0, 0], sizes = [2, 32], strides = [1, 1]} : vector<2x96xf32> to vector<2x32xf32>
    %153 = arith.addf %151, %152 : vector<2x32xf32>
    %154 = arith.negf %153 : vector<2x32xf32>
    %155 = math.exp %154 : vector<2x32xf32>
    %cst_46 = arith.constant 1.000000e+00 : f32
    %156 = vector.broadcast %cst_46 : f32 to vector<2x32xf32>
    %157 = arith.addf %156, %155 : vector<2x32xf32>
    %158 = arith.divf %156, %157 : vector<2x32xf32>
    %159 = vector.extract_strided_slice %149 {offsets = [0, 32], sizes = [2, 32], strides = [1, 1]} : vector<2x96xf32> to vector<2x32xf32>
    %160 = vector.extract_strided_slice %150 {offsets = [0, 32], sizes = [2, 32], strides = [1, 1]} : vector<2x96xf32> to vector<2x32xf32>
    %161 = arith.addf %159, %160 : vector<2x32xf32>
    %162 = arith.negf %161 : vector<2x32xf32>
    %163 = math.exp %162 : vector<2x32xf32>
    %cst_47 = arith.constant 1.000000e+00 : f32
    %164 = vector.broadcast %cst_47 : f32 to vector<2x32xf32>
    %165 = arith.addf %164, %163 : vector<2x32xf32>
    %166 = arith.divf %164, %165 : vector<2x32xf32>
    %167 = vector.extract_strided_slice %149 {offsets = [0, 64], sizes = [2, 32], strides = [1, 1]} : vector<2x96xf32> to vector<2x32xf32>
    %168 = vector.extract_strided_slice %150 {offsets = [0, 64], sizes = [2, 32], strides = [1, 1]} : vector<2x96xf32> to vector<2x32xf32>
    %169 = arith.addf %168, %4 : vector<2x32xf32>
    %170 = arith.mulf %158, %169 : vector<2x32xf32>
    %171 = arith.addf %167, %170 : vector<2x32xf32>
    %172 = math.tanh %171 : vector<2x32xf32>
    %cst_48 = arith.constant 1.000000e+00 : f32
    %173 = vector.broadcast %cst_48 : f32 to vector<2x32xf32>
    %174 = arith.subf %173, %166 : vector<2x32xf32>
    %175 = arith.mulf %174, %172 : vector<2x32xf32>
    %176 = arith.mulf %166, %147 : vector<2x32xf32>
    %177 = arith.addf %175, %176 : vector<2x32xf32>
    %178 = vector.extract_strided_slice %55 {offsets = [0, 4, 0], sizes = [2, 1, 96], strides = [1, 1, 1]} : vector<2x8x224xf32> to vector<2x1x96xf32>
    %179 = vector.shape_cast %178 : vector<2x1x96xf32> to vector<2x96xf32>
    %cst_49 = arith.constant dense<0.000000e+00> : vector<2x96xf32>
    %180 = tpu.matmul %177, %56, %cst_49 {dimension_numbers = #tpu.dot_dimension_numbers<[1], [0], [0], [1], [0, 0, 1, 1], [], []>} : vector<2x32xf32>, vector<32x96xf32>, vector<2x96xf32> -> vector<2x96xf32>
    %181 = vector.extract_strided_slice %179 {offsets = [0, 0], sizes = [2, 32], strides = [1, 1]} : vector<2x96xf32> to vector<2x32xf32>
    %182 = vector.extract_strided_slice %180 {offsets = [0, 0], sizes = [2, 32], strides = [1, 1]} : vector<2x96xf32> to vector<2x32xf32>
    %183 = arith.addf %181, %182 : vector<2x32xf32>
    %184 = arith.negf %183 : vector<2x32xf32>
    %185 = math.exp %184 : vector<2x32xf32>
    %cst_50 = arith.constant 1.000000e+00 : f32
    %186 = vector.broadcast %cst_50 : f32 to vector<2x32xf32>
    %187 = arith.addf %186, %185 : vector<2x32xf32>
    %188 = arith.divf %186, %187 : vector<2x32xf32>
    %189 = vector.extract_strided_slice %179 {offsets = [0, 32], sizes = [2, 32], strides = [1, 1]} : vector<2x96xf32> to vector<2x32xf32>
    %190 = vector.extract_strided_slice %180 {offsets = [0, 32], sizes = [2, 32], strides = [1, 1]} : vector<2x96xf32> to vector<2x32xf32>
    %191 = arith.addf %189, %190 : vector<2x32xf32>
    %192 = arith.negf %191 : vector<2x32xf32>
    %193 = math.exp %192 : vector<2x32xf32>
    %cst_51 = arith.constant 1.000000e+00 : f32
    %194 = vector.broadcast %cst_51 : f32 to vector<2x32xf32>
    %195 = arith.addf %194, %193 : vector<2x32xf32>
    %196 = arith.divf %194, %195 : vector<2x32xf32>
    %197 = vector.extract_strided_slice %179 {offsets = [0, 64], sizes = [2, 32], strides = [1, 1]} : vector<2x96xf32> to vector<2x32xf32>
    %198 = vector.extract_strided_slice %180 {offsets = [0, 64], sizes = [2, 32], strides = [1, 1]} : vector<2x96xf32> to vector<2x32xf32>
    %199 = arith.addf %198, %4 : vector<2x32xf32>
    %200 = arith.mulf %188, %199 : vector<2x32xf32>
    %201 = arith.addf %197, %200 : vector<2x32xf32>
    %202 = math.tanh %201 : vector<2x32xf32>
    %cst_52 = arith.constant 1.000000e+00 : f32
    %203 = vector.broadcast %cst_52 : f32 to vector<2x32xf32>
    %204 = arith.subf %203, %196 : vector<2x32xf32>
    %205 = arith.mulf %204, %202 : vector<2x32xf32>
    %206 = arith.mulf %196, %177 : vector<2x32xf32>
    %207 = arith.addf %205, %206 : vector<2x32xf32>
    %208 = vector.extract_strided_slice %55 {offsets = [0, 5, 0], sizes = [2, 1, 96], strides = [1, 1, 1]} : vector<2x8x224xf32> to vector<2x1x96xf32>
    %209 = vector.shape_cast %208 : vector<2x1x96xf32> to vector<2x96xf32>
    %cst_53 = arith.constant dense<0.000000e+00> : vector<2x96xf32>
    %210 = tpu.matmul %207, %56, %cst_53 {dimension_numbers = #tpu.dot_dimension_numbers<[1], [0], [0], [1], [0, 0, 1, 1], [], []>} : vector<2x32xf32>, vector<32x96xf32>, vector<2x96xf32> -> vector<2x96xf32>
    %211 = vector.extract_strided_slice %209 {offsets = [0, 0], sizes = [2, 32], strides = [1, 1]} : vector<2x96xf32> to vector<2x32xf32>
    %212 = vector.extract_strided_slice %210 {offsets = [0, 0], sizes = [2, 32], strides = [1, 1]} : vector<2x96xf32> to vector<2x32xf32>
    %213 = arith.addf %211, %212 : vector<2x32xf32>
    %214 = arith.negf %213 : vector<2x32xf32>
    %215 = math.exp %214 : vector<2x32xf32>
    %cst_54 = arith.constant 1.000000e+00 : f32
    %216 = vector.broadcast %cst_54 : f32 to vector<2x32xf32>
    %217 = arith.addf %216, %215 : vector<2x32xf32>
    %218 = arith.divf %216, %217 : vector<2x32xf32>
    %219 = vector.extract_strided_slice %209 {offsets = [0, 32], sizes = [2, 32], strides = [1, 1]} : vector<2x96xf32> to vector<2x32xf32>
    %220 = vector.extract_strided_slice %210 {offsets = [0, 32], sizes = [2, 32], strides = [1, 1]} : vector<2x96xf32> to vector<2x32xf32>
    %221 = arith.addf %219, %220 : vector<2x32xf32>
    %222 = arith.negf %221 : vector<2x32xf32>
    %223 = math.exp %222 : vector<2x32xf32>
    %cst_55 = arith.constant 1.000000e+00 : f32
    %224 = vector.broadcast %cst_55 : f32 to vector<2x32xf32>
    %225 = arith.addf %224, %223 : vector<2x32xf32>
    %226 = arith.divf %224, %225 : vector<2x32xf32>
    %227 = vector.extract_strided_slice %209 {offsets = [0, 64], sizes = [2, 32], strides = [1, 1]} : vector<2x96xf32> to vector<2x32xf32>
    %228 = vector.extract_strided_slice %210 {offsets = [0, 64], sizes = [2, 32], strides = [1, 1]} : vector<2x96xf32> to vector<2x32xf32>
    %229 = arith.addf %228, %4 : vector<2x32xf32>
    %230 = arith.mulf %218, %229 : vector<2x32xf32>
    %231 = arith.addf %227, %230 : vector<2x32xf32>
    %232 = math.tanh %231 : vector<2x32xf32>
    %cst_56 = arith.constant 1.000000e+00 : f32
    %233 = vector.broadcast %cst_56 : f32 to vector<2x32xf32>
    %234 = arith.subf %233, %226 : vector<2x32xf32>
    %235 = arith.mulf %234, %232 : vector<2x32xf32>
    %236 = arith.mulf %226, %207 : vector<2x32xf32>
    %237 = arith.addf %235, %236 : vector<2x32xf32>
    %238 = vector.extract_strided_slice %55 {offsets = [0, 6, 0], sizes = [2, 1, 96], strides = [1, 1, 1]} : vector<2x8x224xf32> to vector<2x1x96xf32>
    %239 = vector.shape_cast %238 : vector<2x1x96xf32> to vector<2x96xf32>
    %cst_57 = arith.constant dense<0.000000e+00> : vector<2x96xf32>
    %240 = tpu.matmul %237, %56, %cst_57 {dimension_numbers = #tpu.dot_dimension_numbers<[1], [0], [0], [1], [0, 0, 1, 1], [], []>} : vector<2x32xf32>, vector<32x96xf32>, vector<2x96xf32> -> vector<2x96xf32>
    %241 = vector.extract_strided_slice %239 {offsets = [0, 0], sizes = [2, 32], strides = [1, 1]} : vector<2x96xf32> to vector<2x32xf32>
    %242 = vector.extract_strided_slice %240 {offsets = [0, 0], sizes = [2, 32], strides = [1, 1]} : vector<2x96xf32> to vector<2x32xf32>
    %243 = arith.addf %241, %242 : vector<2x32xf32>
    %244 = arith.negf %243 : vector<2x32xf32>
    %245 = math.exp %244 : vector<2x32xf32>
    %cst_58 = arith.constant 1.000000e+00 : f32
    %246 = vector.broadcast %cst_58 : f32 to vector<2x32xf32>
    %247 = arith.addf %246, %245 : vector<2x32xf32>
    %248 = arith.divf %246, %247 : vector<2x32xf32>
    %249 = vector.extract_strided_slice %239 {offsets = [0, 32], sizes = [2, 32], strides = [1, 1]} : vector<2x96xf32> to vector<2x32xf32>
    %250 = vector.extract_strided_slice %240 {offsets = [0, 32], sizes = [2, 32], strides = [1, 1]} : vector<2x96xf32> to vector<2x32xf32>
    %251 = arith.addf %249, %250 : vector<2x32xf32>
    %252 = arith.negf %251 : vector<2x32xf32>
    %253 = math.exp %252 : vector<2x32xf32>
    %cst_59 = arith.constant 1.000000e+00 : f32
    %254 = vector.broadcast %cst_59 : f32 to vector<2x32xf32>
    %255 = arith.addf %254, %253 : vector<2x32xf32>
    %256 = arith.divf %254, %255 : vector<2x32xf32>
    %257 = vector.extract_strided_slice %239 {offsets = [0, 64], sizes = [2, 32], strides = [1, 1]} : vector<2x96xf32> to vector<2x32xf32>
    %258 = vector.extract_strided_slice %240 {offsets = [0, 64], sizes = [2, 32], strides = [1, 1]} : vector<2x96xf32> to vector<2x32xf32>
    %259 = arith.addf %258, %4 : vector<2x32xf32>
    %260 = arith.mulf %248, %259 : vector<2x32xf32>
    %261 = arith.addf %257, %260 : vector<2x32xf32>
    %262 = math.tanh %261 : vector<2x32xf32>
    %cst_60 = arith.constant 1.000000e+00 : f32
    %263 = vector.broadcast %cst_60 : f32 to vector<2x32xf32>
    %264 = arith.subf %263, %256 : vector<2x32xf32>
    %265 = arith.mulf %264, %262 : vector<2x32xf32>
    %266 = arith.mulf %256, %237 : vector<2x32xf32>
    %267 = arith.addf %265, %266 : vector<2x32xf32>
    %268 = vector.extract_strided_slice %55 {offsets = [0, 7, 0], sizes = [2, 1, 96], strides = [1, 1, 1]} : vector<2x8x224xf32> to vector<2x1x96xf32>
    %269 = vector.shape_cast %268 : vector<2x1x96xf32> to vector<2x96xf32>
    %cst_61 = arith.constant dense<0.000000e+00> : vector<2x96xf32>
    %270 = tpu.matmul %267, %56, %cst_61 {dimension_numbers = #tpu.dot_dimension_numbers<[1], [0], [0], [1], [0, 0, 1, 1], [], []>} : vector<2x32xf32>, vector<32x96xf32>, vector<2x96xf32> -> vector<2x96xf32>
    %271 = vector.extract_strided_slice %269 {offsets = [0, 0], sizes = [2, 32], strides = [1, 1]} : vector<2x96xf32> to vector<2x32xf32>
    %272 = vector.extract_strided_slice %270 {offsets = [0, 0], sizes = [2, 32], strides = [1, 1]} : vector<2x96xf32> to vector<2x32xf32>
    %273 = arith.addf %271, %272 : vector<2x32xf32>
    %274 = arith.negf %273 : vector<2x32xf32>
    %275 = math.exp %274 : vector<2x32xf32>
    %cst_62 = arith.constant 1.000000e+00 : f32
    %276 = vector.broadcast %cst_62 : f32 to vector<2x32xf32>
    %277 = arith.addf %276, %275 : vector<2x32xf32>
    %278 = arith.divf %276, %277 : vector<2x32xf32>
    %279 = vector.extract_strided_slice %269 {offsets = [0, 32], sizes = [2, 32], strides = [1, 1]} : vector<2x96xf32> to vector<2x32xf32>
    %280 = vector.extract_strided_slice %270 {offsets = [0, 32], sizes = [2, 32], strides = [1, 1]} : vector<2x96xf32> to vector<2x32xf32>
    %281 = arith.addf %279, %280 : vector<2x32xf32>
    %282 = arith.negf %281 : vector<2x32xf32>
    %283 = math.exp %282 : vector<2x32xf32>
    %cst_63 = arith.constant 1.000000e+00 : f32
    %284 = vector.broadcast %cst_63 : f32 to vector<2x32xf32>
    %285 = arith.addf %284, %283 : vector<2x32xf32>
    %286 = arith.divf %284, %285 : vector<2x32xf32>
    %287 = vector.extract_strided_slice %269 {offsets = [0, 64], sizes = [2, 32], strides = [1, 1]} : vector<2x96xf32> to vector<2x32xf32>
    %288 = vector.extract_strided_slice %270 {offsets = [0, 64], sizes = [2, 32], strides = [1, 1]} : vector<2x96xf32> to vector<2x32xf32>
    %289 = arith.addf %288, %4 : vector<2x32xf32>
    %290 = arith.mulf %278, %289 : vector<2x32xf32>
    %291 = arith.addf %287, %290 : vector<2x32xf32>
    %292 = math.tanh %291 : vector<2x32xf32>
    %cst_64 = arith.constant 1.000000e+00 : f32
    %293 = vector.broadcast %cst_64 : f32 to vector<2x32xf32>
    %294 = arith.subf %293, %286 : vector<2x32xf32>
    %295 = arith.mulf %294, %292 : vector<2x32xf32>
    %296 = arith.mulf %286, %267 : vector<2x32xf32>
    %297 = arith.addf %295, %296 : vector<2x32xf32>
    %298 = vector.extract_strided_slice %55 {offsets = [0, 7, 128], sizes = [2, 1, 96], strides = [1, 1, 1]} : vector<2x8x224xf32> to vector<2x1x96xf32>
    %299 = vector.shape_cast %298 : vector<2x1x96xf32> to vector<2x96xf32>
    %300 = vector.extract_strided_slice %299 {offsets = [0, 0], sizes = [2, 32], strides = [1, 1]} : vector<2x96xf32> to vector<2x32xf32>
    %301 = arith.negf %300 : vector<2x32xf32>
    %302 = math.exp %301 : vector<2x32xf32>
    %cst_65 = arith.constant 1.000000e+00 : f32
    %303 = vector.broadcast %cst_65 : f32 to vector<2x32xf32>
    %304 = arith.addf %303, %302 : vector<2x32xf32>
    %305 = arith.divf %303, %304 : vector<2x32xf32>
    %306 = vector.extract_strided_slice %299 {offsets = [0, 32], sizes = [2, 32], strides = [1, 1]} : vector<2x96xf32> to vector<2x32xf32>
    %307 = arith.negf %306 : vector<2x32xf32>
    %308 = math.exp %307 : vector<2x32xf32>
    %cst_66 = arith.constant 1.000000e+00 : f32
    %309 = vector.broadcast %cst_66 : f32 to vector<2x32xf32>
    %310 = arith.addf %309, %308 : vector<2x32xf32>
    %311 = arith.divf %309, %310 : vector<2x32xf32>
    %312 = vector.extract_strided_slice %299 {offsets = [0, 64], sizes = [2, 32], strides = [1, 1]} : vector<2x96xf32> to vector<2x32xf32>
    %313 = vector.broadcast %5 : vector<1x32xf32> to vector<2x32xf32>
    %314 = arith.mulf %305, %313 : vector<2x32xf32>
    %315 = arith.addf %312, %314 : vector<2x32xf32>
    %316 = math.tanh %315 : vector<2x32xf32>
    %cst_67 = arith.constant 1.000000e+00 : f32
    %317 = vector.broadcast %cst_67 : f32 to vector<2x32xf32>
    %318 = arith.subf %317, %311 : vector<2x32xf32>
    %319 = arith.mulf %318, %316 : vector<2x32xf32>
    %c0_68 = arith.constant 0 : index
    %c0_69 = arith.constant 0 : index
    %320 = vector.load %arg4[%c0_68, %c0_69] : memref<64x32xf32, #tpu.memory_space<vmem>>, vector<32x32xf32>
    %cst_70 = arith.constant dense<0.000000e+00> : vector<2x32xf32>
    %321 = tpu.matmul %297, %320, %cst_70 {dimension_numbers = #tpu.dot_dimension_numbers<[1], [0], [0], [1], [0, 0, 1, 1], [], []>} : vector<2x32xf32>, vector<32x32xf32>, vector<2x32xf32> -> vector<2x32xf32>
    %c32 = arith.constant 32 : index
    %c0_71 = arith.constant 0 : index
    %322 = vector.load %arg4[%c32, %c0_71] : memref<64x32xf32, #tpu.memory_space<vmem>>, vector<32x32xf32>
    %cst_72 = arith.constant dense<0.000000e+00> : vector<2x32xf32>
    %323 = tpu.matmul %319, %322, %cst_72 {dimension_numbers = #tpu.dot_dimension_numbers<[1], [0], [0], [1], [0, 0, 1, 1], [], []>} : vector<2x32xf32>, vector<32x32xf32>, vector<2x32xf32> -> vector<2x32xf32>
    %324 = arith.addf %321, %323 : vector<2x32xf32>
    %325 = vector.broadcast %6 : vector<1x32xf32> to vector<2x32xf32>
    %326 = arith.addf %324, %325 : vector<2x32xf32>
    %327 = math.tanh %326 : vector<2x32xf32>
    %c0_73 = arith.constant 0 : index
    %c0_74 = arith.constant 0 : index
    %328 = vector.load %arg6[%c0_73, %c0_74] : memref<2x32xf32, #tpu.memory_space<vmem>>, vector<2x32xf32>
    tpu.vector_store %arg6[%c0_73, %c0_74], %327 {strides = array<i32>} : memref<2x32xf32, #tpu.memory_space<vmem>>, vector<2x32xf32>,
    return
  }
}

</mosaic_0001>

<bundles_post_ra>
// kernel: tpsenet_forward.1
= control target key start
LH: loop header
LB: loop body
LE: loop exit
PB: predicated region body
PF: predicated region fallthrough
CT: control target
= control target key end

     0   :  { %v32_v18 = vlaneseq  ;;  %s2936_s0 = inlined_call_operand.vmem [shape: f32[2,8,128], index: 0, kind: input, shape index: {}]   ;;  %s2937_s1 = inlined_call_operand.vmem [shape: f32[3,128,32], index: 1, kind: input, shape index: {}]   ;;  %s2938_s2 = inlined_call_operand.vmem [shape: f32[32,224], index: 2, kind: input, shape index: {}]   ;;  %s2939_s3 = inlined_call_operand.vmem [shape: f32[32,96], index: 3, kind: input, shape index: {}]   ;;  %s2940_s4 = inlined_call_operand.vmem [shape: f32[64,32], index: 4, kind: input, shape index: {}]   ;;  %s2941_s5 = inlined_call_operand.vmem [shape: f32[8,256], index: 5, kind: input, shape index: {}]   ;;  %s2942_s6 = inlined_call_operand.hbm [shape: f32[2,32], index: 6, kind: output, shape index: {}]  }
   0x1   :  { %v1827_v0 = vld [vmem:[%s2937_s1 + $0xf8] sm:$0xff]  ;;  %v1826_v2 = vld [vmem:[%s2937_s1 + $0xf0] sm:$0xff]  ;;  %v1825_v4 = vld [vmem:[%s2937_s1 + $0xe8] sm:$0xff] }
   0x2   :  { %v92_v1 = vld [vmem:[%s2937_s1 + $0x78] sm:$0xff]  ;;  %1989 = vmatprep.subr.mxu0 %v1827_v0  ;;  %v91_v3 = vld [vmem:[%s2937_s1 + $0x70] sm:$0xff]  ;;  %v90_v5 = vld [vmem:[%s2937_s1 + $0x68] sm:$0xff] }
   0x3   :  { %2024 = vmatprep.subr.mxu1 %v92_v1  ;;  %1990 = vmatpush3.msra.mxu0 %v1827_v0  ;;  %v1824_v6 = vld [vmem:[%s2937_s1 + $0xe0] sm:$0xff]  ;;  %v1823_v8 = vld [vmem:[%s2937_s1 + $0xd8] sm:$0xff]  ;;  %v1822_v10 = vld [vmem:[%s2937_s1 + $0xd0] sm:$0xff] }
   0x4   :  { %2025 = vmatpush3.msra.mxu1 %v92_v1  ;;  %1991 = vmatprep.subr.mxu0 %v1826_v2  ;;  %v89_v7 = vld [vmem:[%s2937_s1 + $0x60] sm:$0xff]  ;;  %v88_v9 = vld [vmem:[%s2937_s1 + $0x58] sm:$0xff]  ;;  %v87_v11 = vld [vmem:[%s2937_s1 + $0x50] sm:$0xff] }
   0x5   :  { %2026 = vmatprep.subr.mxu1 %v91_v3  ;;  %1992 = vmatpush3.msra.mxu0 %v1826_v2  ;;  %v1821_v12 = vld [vmem:[%s2937_s1 + $0xc8] sm:$0xff]  ;;  %v1820_v14 = vld [vmem:[%s2937_s1 + $0xc0] sm:$0xff]  ;;  %v1819_v16 = vld [vmem:[%s2937_s1 + $0xb8] sm:$0xff] }
   0x6   :  { %2027 = vmatpush3.msra.mxu1 %v91_v3  ;;  %1993 = vmatprep.subr.mxu0 %v1825_v4  ;;  %v86_v13 = vld [vmem:[%s2937_s1 + $0x48] sm:$0xff]  ;;  %v85_v15 = vld [vmem:[%s2937_s1 + $0x40] sm:$0xff]  ;;  %v84_v17 = vld [vmem:[%s2937_s1 + $0x38] sm:$0xff] }
   0x7   :  { %2028 = vmatprep.subr.mxu1 %v90_v5  ;;  %1994 = vmatpush3.msra.mxu0 %v1825_v4  ;;  %v1818_v19 = vld [vmem:[%s2937_s1 + $0xb0] sm:$0xff] }
   0x8   :  { %2029 = vmatpush3.msra.mxu1 %v90_v5  ;;  %1995 = vmatprep.subr.mxu0 %v1824_v6  ;;  %v83_v20 = vld [vmem:[%s2937_s1 + $0x30] sm:$0xff] }
   0x9   :  { %2030 = vmatprep.subr.mxu1 %v89_v7  ;;  %1996 = vmatpush3.msra.mxu0 %v1824_v6 }
   0xa   :  { %2031 = vmatpush3.msra.mxu1 %v89_v7  ;;  %1997 = vmatprep.subr.mxu0 %v1823_v8 }
   0xb   :  { %2032 = vmatprep.subr.mxu1 %v88_v9  ;;  %1998 = vmatpush3.msra.mxu0 %v1823_v8 }
   0xc   :  { %2033 = vmatpush3.msra.mxu1 %v88_v9  ;;  %1999 = vmatprep.subr.mxu0 %v1822_v10 }
   0xd   :  { %2034 = vmatprep.subr.mxu1 %v87_v11  ;;  %2000 = vmatpush3.msra.mxu0 %v1822_v10 }
   0xe   :  { %2035 = vmatpush3.msra.mxu1 %v87_v11  ;;  %2001 = vmatprep.subr.mxu0 %v1821_v12 }
   0xf   :  { %2036 = vmatprep.subr.mxu1 %v86_v13  ;;  %2002 = vmatpush3.msra.mxu0 %v1821_v12 }
  0x10   :  { %2037 = vmatpush3.msra.mxu1 %v86_v13  ;;  %2003 = vmatprep.subr.mxu0 %v1820_v14 }
  0x11   :  { %2038 = vmatprep.subr.mxu1 %v85_v15  ;;  %2004 = vmatpush3.msra.mxu0 %v1820_v14 }
  0x12   :  { %2039 = vmatpush3.msra.mxu1 %v85_v15 }
  0x13   :  { %11 = vsyncpa [#allocation3], 0  ;;  %2005 = vmatprep.subr.mxu0 %v1819_v16  ;;  %2040 = vmatprep.subr.mxu1 %v84_v17  ;;  %v1817_v21 = vld [vmem:[%s2937_s1 + $0xa8] sm:$0xff]  ;;  %v2447_v23 = vshrl.u32 %v32_v18, 7  ;;  %v1816_v24 = vld [vmem:[%s2937_s1 + $0xa0] sm:$0xff]  ;;  %v2341_v7 = vmov 0.0  }
  0x14   :  { %2006 = vmatpush3.msra.mxu0 %v1819_v16  ;;  %2041 = vmatpush3.msra.mxu1 %v84_v17  ;;  %v82_v22 = vld [vmem:[%s2937_s1 + $0x28] sm:$0xff]  ;;  %v81_v25 = vld [vmem:[%s2937_s1 + $0x20] sm:$0xff]  ;;  %v1815_v26 = vld [vmem:[%s2937_s1 + $0x98] sm:$0xff]  ;;  %vm2342_vm6 = vmmov 0   ;;  %s2343_s22 = smov 64   ;;  %vm377_vm7 = vcmask 261120  }
  0x15   :  { %2007 = vmatprep.subr.mxu0 %v1818_v19  ;;  %2042 = vmatprep.subr.mxu1 %v83_v20  ;;  %v80_v27 = vld [vmem:[%s2937_s1 + $0x18] sm:$0xff]  ;;  %v2464_v28 = vld [vmem:[%s2936_s0] sm:$0xff]  ;;  %v2469_v29 = vld [vmem:[%s2936_s0 + $0x8] sm:$0xff]  ;;  %v2472_v30 = vadd.s32 8, %v2447_v23  ;;  %v39_v36 = vand.u32 7, %v2447_v23  ;;  %vm63_vm0 = vcmp.lt.s32.totalorder %v2447_v23, 1 }
  0x16   :  { %2008 = vmatpush3.msra.mxu0 %v1818_v19  ;;  %2043 = vmatpush3.msra.mxu1 %v83_v20  ;;  %v1814_v31 = vld [vmem:[%s2937_s1 + $0x90] sm:$0xff]  ;;  %v1813_v33 = vld [vmem:[%s2937_s1 + $0x88] sm:$0xff]  ;;  %v61_v35 = vrot.slane %v2464_v28, 7  ;;  %v62_v37 = vrot.slane %v2469_v29, 7  ;;  %v1812_v39 = vld [vmem:[%s2937_s1 + $0x80] sm:$0xff]  ;;  %v70_v41 = vrot.slane %v2464_v28, 1 }
  0x17   :  { %2009 = vmatprep.subr.mxu0 %v1817_v21  ;;  %2044 = vmatprep.subr.mxu1 %v82_v22  ;;  %v79_v32 = vld [vmem:[%s2937_s1 + $0x10] sm:$0xff]  ;;  %v78_v34 = vld [vmem:[%s2937_s1 + $0x8] sm:$0xff]  ;;  %v46_v38 = vand.u32 7, %v2472_v30  ;;  %v77_v40 = vld [vmem:[%s2937_s1] sm:$0xff]  ;;  %v71_v42 = vrot.slane %v2469_v29, 1  ;;  %vm72_vm1 = vcmp.lt.s32.totalorder %v2447_v23, 7 }
  0x18   :  { %2010 = vmatpush3.msra.mxu0 %v1817_v21  ;;  %2045 = vmatpush3.msra.mxu1 %v82_v22  ;;  %v65_v43 = vsel %vm63_vm0, %v62_v37, %v61_v35  ;;  %vm1881_vm2 = vcmp.ne.s32.totalorder %v39_v36, 0  ;;  %v64_v44 = vsel %vm63_vm0, %v61_v35, %v62_v37  ;;  %v1847_v45 = vld [vmem:[%s2937_s1 + $0x178] sm:$0xff]  ;;  %vm1883_vm4 = vcmp.ne.s32.totalorder %v39_v36, 7  ;;  %v1846_v47 = vld [vmem:[%s2937_s1 + $0x170] sm:$0xff]  ;;  %v1845_v48 = vld [vmem:[%s2937_s1 + $0x168] sm:$0xff]  ;;  %s2344_s25 = smov 96  }
  0x19   :  { %2011 = vmatprep.subr.mxu0 %v1816_v24  ;;  %2046 = vmatprep.subr.mxu1 %v81_v25  ;;  %vm1882_vm3 = vcmp.ne.s32.totalorder %v46_v38, 0  ;;  %v73_v46 = vsel %vm72_vm1, %v70_v41, %v71_v42  ;;  %v1844_v49 = vld [vmem:[%s2937_s1 + $0x160] sm:$0xff]  ;;  %v1843_v50 = vld [vmem:[%s2937_s1 + $0x158] sm:$0xff]  ;;  %v1842_v51 = vld [vmem:[%s2937_s1 + $0x150] sm:$0xff]  ;;  %v74_v62 = vsel %vm72_vm1, %v71_v42, %v70_v41  ;;  %vm1884_vm5 = vcmp.ne.s32.totalorder %v46_v38, 7  ;;  %s2345_s19 = smov [#allocation2]  }
  0x1a   :  { %2012 = vmatpush3.msra.mxu0 %v1816_v24  ;;  %2047 = vmatpush3.msra.mxu1 %v81_v25  ;;  %v1841_v52 = vld [vmem:[%s2937_s1 + $0x148] sm:$0xff]  ;;  %v1840_v53 = vld [vmem:[%s2937_s1 + $0x140] sm:$0xff]  ;;  %v1839_v54 = vld [vmem:[%s2937_s1 + $0x138] sm:$0xff]  ;;  %v369_v38 = vsub.s32 0, %v2447_v23  ;;  %vm602_vm8 = vcmask 1041409   ;;  %s1803_s20 = sshll.u32 %s2345_s19, 4  ;;  %s1804_s20 = int_to_ptr.vmem [resolvable:$true] %s1803_s20 }
  0x1b   :  { %2013 = vmatprep.subr.mxu0 %v1815_v26  ;;  %2048 = vmatprep.subr.mxu1 %v80_v27  ;;  %v1838_v55 = vld [vmem:[%s2937_s1 + $0x130] sm:$0xff]  ;;  %v1837_v56 = vld [vmem:[%s2937_s1 + $0x128] sm:$0xff]  ;;  %v1836_v57 = vld [vmem:[%s2937_s1 + $0x120] sm:$0xff]  ;;  %vm1795_vm9 = vcmask 254976   ;;  %s2319_s21 = scalar_lea.vmem %s1804_s20, 32  ;;  %p2324_p1 = scmp.lt.s32.totalorder %s1804_s20, %s1804_s20 }
  0x1c   :  { %2014 = vmatpush3.msra.mxu0 %v1815_v26  ;;  %2049 = vmatpush3.msra.mxu1 %v80_v27  ;;  %v1835_v58 = vld [vmem:[%s2937_s1 + $0x118] sm:$0xff]  ;;  %v1834_v59 = vld [vmem:[%s2937_s1 + $0x110] sm:$0xff]  ;;  %v1833_v60 = vld [vmem:[%s2937_s1 + $0x108] sm:$0xff]  ;;  %p2320_p0 = scmp.ne.s32.totalorder %s1804_s20, %s2319_s21  ;;  %p2325_p2 = scmp.lt.s32.totalorder %s2319_s21, %s2319_s21 }
  0x1d   :  { %2015 = vmatprep.subr.mxu0 %v1814_v31  ;;  %2050 = vmatprep.subr.mxu1 %v79_v32  ;;  %v1832_v61 = vld [vmem:[%s2937_s1 + $0x100] sm:$0xff]  ;;  %v365_v63 = vld [vmem:[%s2938_s2 + $0x38] sm:$0xff]  ;;  %v364_v0 = vld [vmem:[%s2938_s2 + $0x30] sm:$0xff] }
  0x1e   :  { %2016 = vmatpush3.msra.mxu0 %v1814_v31  ;;  %2051 = vmatpush3.msra.mxu1 %v79_v32  ;;  %v363_v1 = vld [vmem:[%s2938_s2 + $0x28] sm:$0xff]  ;;  %v362_v2 = vld [vmem:[%s2938_s2 + $0x20] sm:$0xff]  ;;  %v361_v3 = vld [vmem:[%s2938_s2 + $0x18] sm:$0xff]  ;;  %p2326_p3 = por %p2325_p2, %p2324_p1 }
  0x1f   :  { %2017 = vmatprep.subr.mxu0 %v1813_v33  ;;  %2052 = vmatprep.subr.mxu1 %v78_v34  ;;  %v360_v4 = vld [vmem:[%s2938_s2 + $0x10] sm:$0xff]  ;;  %v359_v5 = vld [vmem:[%s2938_s2 + $0x8] sm:$0xff]  ;;  %v358_v6 = vld [vmem:[%s2938_s2] sm:$0xff] }
  0x20   :  { %2018 = vmatpush3.msra.mxu0 %v1813_v33  ;;  %2053 = vmatpush3.msra.mxu1 %v78_v34  ;;  %v2599_v8 = vld [vmem:[%s2939_s3 + $0x18] sm:$0xff]  ;;  %v2606_v9 = vld [vmem:[%s2939_s3 + $0x10] sm:$0xff]  ;;  %v2613_v10 = vld [vmem:[%s2939_s3 + $0x8] sm:$0xff]  ;;  %p2327_p4 = pnand %p2326_p3, %p2320_p0 }
  0x21   :  { %2019 = vmatprep.subr.mxu0 %v1812_v39  ;;  %2054 = vmatprep.subr.mxu1 %v77_v40  ;;  %v2620_v11 = vld [vmem:[%s2939_s3] sm:$0xff] }
  0x22   :  { %2020 = vmatpush3.msra.mxu0 %v1812_v39  ;;  %2021 = vmatprep.mubr.f32.mxu0 %v2464_v28  ;;  %v27_v12 = vld [vmem:[%s2941_s5 + $0x2] ss:$0 sm:$0xff]  ;;  %v24_v24 = vld [vmem:[%s2941_s5] ss:$0 sm:$0xff] }
  0x23   :  { %2055 = vmatpush3.msra.mxu1 %v77_v40  ;;  %2056 = vmatprep.mubr.msk.f32.mxu1 %vm1881_vm2, %v65_v43  ;;  %v2671_v39 = vld [vmem:[%s2941_s5 + $0x1] ss:$8 sm:$0x3] }
  0x24   :  { %2022 = vmatmul.mubr.f32.vlgmr.msra.gmra.mxu0 %v2469_v29  ;;  %2057 = vmatmul.mubr.msk.f32.vlgmr.msra.gmra.mxu1 %vm1882_vm3, %v64_v44  ;;  %v370_v40 = vrot.slane %v2671_v39, %v369_v38 }
  0x25   :  { %2059 = vmatprep.subr.mxu0 %v1847_v45  ;;  %2091 = vmatprep.mubr.msk.f32.mxu0 %vm1883_vm4, %v73_v46 }
  0x26   :  { %2060 = vmatpush3.msra.mxu0 %v1847_v45  ;;  %408 = vmatprep.subr.mxu1 %v365_v63 }
  0x27   :  { %2061 = vmatprep.subr.mxu0 %v1846_v47  ;;  %409 = vmatpush1.msra.mxu1 %v364_v0 }
  0x28   :  { %2062 = vmatpush3.msra.mxu0 %v1846_v47  ;;  %410 = vmatprep.subr.mxu1 %v363_v1 }
  0x29   :  { %2063 = vmatprep.subr.mxu0 %v1845_v48  ;;  %411 = vmatpush1.msra.mxu1 %v362_v2 }
  0x2a   :  { %2064 = vmatpush3.msra.mxu0 %v1845_v48  ;;  %412 = vmatprep.subr.mxu1 %v361_v3 }
  0x2b   :  { %2065 = vmatprep.subr.mxu0 %v1844_v49  ;;  %413 = vmatpush1.msra.mxu1 %v360_v4 }
  0x2c   :  { %2066 = vmatpush3.msra.mxu0 %v1844_v49  ;;  %414 = vmatprep.subr.mxu1 %v359_v5 }
  0x2d   :  { %2067 = vmatprep.subr.mxu0 %v1843_v50  ;;  %415 = vmatpush1.msra.mxu1 %v358_v6 }
  0x2e   :  { %2068 = vmatpush3.msra.mxu0 %v1843_v50  ;;  %448 = vmatprep.mubr.f32.mxu1 %v2341_v7 }
  0x2f   :  { %2069 = vmatprep.subr.mxu0 %v1842_v51  ;;  %2094 = vmatprep.subr.mxu1 %v2341_v7 }
  0x30   :  { %2070 = vmatpush3.msra.mxu0 %v1842_v51  ;;  %557 = vrot.lane.b32.xlu0 %v27_v12, %s2343_s22 }
  0x31   :  { %2071 = vmatprep.subr.mxu0 %v1841_v52 }
  0x32   :  { %2072 = vmatpush3.msra.mxu0 %v1841_v52 }
  0x33   :  { %2073 = vmatprep.subr.mxu0 %v1840_v53 }
  0x34   :  { %2074 = vmatpush3.msra.mxu0 %v1840_v53 }
  0x35   :  { %2075 = vmatprep.subr.mxu0 %v1839_v54 }
  0x36   :  { %2076 = vmatpush3.msra.mxu0 %v1839_v54 }
  0x37   :  { %2077 = vmatprep.subr.mxu0 %v1838_v55 }
  0x38   :  { %2078 = vmatpush3.msra.mxu0 %v1838_v55 }
  0x39   :  { %2079 = vmatprep.subr.mxu0 %v1837_v56 }
  0x3a   :  { %2080 = vmatpush3.msra.mxu0 %v1837_v56 }
  0x3b   :  { %2081 = vmatprep.subr.mxu0 %v1836_v57 }
  0x3c   :  { %2082 = vmatpush3.msra.mxu0 %v1836_v57 }
  0x3d   :  { %2083 = vmatprep.subr.mxu0 %v1835_v58 }
  0x3e   :  { %2084 = vmatpush3.msra.mxu0 %v1835_v58 }
  0x3f   :  { %2085 = vmatprep.subr.mxu0 %v1834_v59 }
  0x40   :  { %2086 = vmatpush3.msra.mxu0 %v1834_v59 }
  0x41   :  { %2087 = vmatprep.subr.mxu0 %v1833_v60 }
  0x42   :  { %2088 = vmatpush3.msra.mxu0 %v1833_v60 }
  0x43   :  { %2089 = vmatprep.subr.mxu0 %v1832_v61 }
  0x44   :  { %2090 = vmatpush3.msra.mxu0 %v1832_v61 }
  0x45   :  { %2092 = vmatmul.mubr.msk.f32.vlgmr.msra.gmra.mxu0 %vm1884_vm5, %v74_v62  ;;  %2127 = vmatprep.subr.mxu0 %v2341_v7 }
  0x46   :  { %2128 = vmatpush3.msra.mxu0 %v2599_v8  ;;  %2135 = vmatprep.mubr.msk.f32.mxu0 %vm2342_vm6, %v2341_v7 }
  0x47   :  { %2129 = vmatprep.subr.mxu0 %v2341_v7 }
  0x48   :  { %2130 = vmatpush3.msra.mxu0 %v2606_v9 }
  0x49   :  { %2131 = vmatprep.subr.mxu0 %v2341_v7 }
  0x4a   :  { %2132 = vmatpush3.msra.mxu0 %v2613_v10 }
  0x4b   :  { %2133 = vmatprep.subr.mxu0 %v2341_v7 }
  0x4c   :  { %2134 = vmatpush3.msra.mxu0 %v2620_v11 }
  0x4d   :  { %2149 = vmatprep.subr.mxu0 %v2341_v7 }
  0xa2   :  { %v2662_v33 = vpop.permute.xlu0 %557 }
  0xe4   :  { %v2023_v13 = vpop.f32.mrf.mxu0  ;;  %v2058_v14 = vpop.f32.mrf.mxu1 }
  0xe5   :  { %v257_v18 = vadd.f32 %v2058_v14, %v2023_v13 }
  0xe6   :  { %v176_v15 = vpop.f32.mrf.mxu0  ;;  %v251_v16 = vpop.f32.mrf.mxu1 }
  0xe7   :  { %v252_v19 = vadd.f32 %v251_v16, %v176_v15 }
 0x105   :  { %v2093_v17 = vpop.f32.mrf.mxu0 }
 0x106   :  { %v353_v21 = vadd.f32 %v2093_v17, %v257_v18 }
 0x107   :  { %v343_v20 = vpop.f32.mrf.mxu0 }
 0x108   :  { %v352_v22 = vadd.f32 %v343_v20, %v252_v19  ;;  %v355_v26 = vadd.f32 %v353_v21, %v24_v24 }
 0x10a   :  { %v354_v25 = vadd.f32 %v352_v22, %v24_v24  ;;  %v357_v28 = vmax.f32 %v355_v26, 0.0 }
 0x10c   :  { %v356_v27 = vmax.f32 %v354_v25, 0.0 }
 0x10e   :  { %1852 = vmatmul.mubr.msk.f32.vlgmr.msra.gmra.mxu1 %vm377_vm7, %v356_v27 }
 0x10f   :  { %2095 = vmatpush3.msra.mxu1 %v2599_v8  ;;  %454 = vmatprep.mubr.f32.mxu1 %v2341_v7 }
 0x110   :  { %2096 = vmatprep.subr.mxu1 %v2341_v7 }
 0x111   :  { %2097 = vmatpush3.msra.mxu1 %v2606_v9 }
 0x112   :  { %2098 = vmatprep.subr.mxu1 %v2341_v7  ;;  %1853 = vmatmul.mubr.msk.f32.gmra.mxu1 %vm377_vm7, %v357_v28 }
 0x113   :  { %2099 = vmatpush3.msra.mxu1 %v2613_v10  ;;  %2102 = vmatprep.mubr.msk.f32.mxu1 %vm2342_vm6, %v2341_v7 }
 0x114   :  { %2100 = vmatprep.subr.mxu1 %v2341_v7 }
 0x115   :  { %2101 = vmatpush3.msra.mxu1 %v2620_v11 }
 0x116   :  { %2103 = vmatmul.mubr.f32.vlgmr.msra.gmra.mxu1 %v2341_v7  ;;  %2105 = vmatprep.subr.mxu1 %v2341_v7 }
 0x117   :  { %2106 = vmatpush3.msra.mxu1 %v2599_v8  ;;  %2113 = vmatprep.mubr.msk.f32.mxu1 %vm2342_vm6, %v2341_v7 }
 0x118   :  { %2107 = vmatprep.subr.mxu1 %v2341_v7 }
 0x119   :  { %2108 = vmatpush3.msra.mxu1 %v2606_v9 }
 0x11a   :  { %2109 = vmatprep.subr.mxu1 %v2341_v7 }
 0x11b   :  { %2110 = vmatpush3.msra.mxu1 %v2613_v10 }
 0x11c   :  { %2111 = vmatprep.subr.mxu1 %v2341_v7 }
 0x11d   :  { %2112 = vmatpush3.msra.mxu1 %v2620_v11 }
 0x11e   :  { %2116 = vmatprep.subr.mxu1 %v2341_v7 }
 0x1ce   :  { %v450_v29 = vpop.f32.mrf.mxu1 }
 0x1cf   :  { %v2674_v41 = vadd.f32 %v450_v29, %v370_v40 }
 0x1d0   :  { %v2658_v30 = vpop.f32.mrf.mxu1 }
 0x1d2   :  { %v456_v31 = vpop.f32.mrf.mxu1 }
 0x1d3   :  { %v2676_v43 = vadd.f32 %v456_v31, %v370_v40 }
 0x1d4   :  { %v2660_v32 = vpop.f32.mrf.mxu1 }
 0x1d6   :  { %v534_v34 = vpop.f32.mrf.mxu1 }
 0x1d7   :  { %v560_v35 = vadd.f32 %v2662_v33, %v534_v34  ;;  %v539_v42 = vrot.slane %v534_v34, 1  ;;  %v542_v44 = vadd.f32 %v534_v34, %v2674_v41 }
 0x1d8   :  { %v2104_v36 = vpop.f32.mrf.mxu1 }
 0x1d9   :  { %563 = vrot.lane.b32.xlu1 %v560_v35, %s2343_s22  ;;  %v562_v37 = vrot.slane %v560_v35, 1  ;;  %v543_v45 = vadd.f32 %v539_v42, %v2676_v43  ;;  %v1854_v46 = vmul.f32 -1.442695, %v542_v44 }
 0x1db   :  { %565 = vrot.lane.b32.xlu0 %v562_v37, %s2343_s22  ;;  %v1855_v47 = vmul.f32 -1.442695, %v543_v45  ;;  %2209 = vpow2.f32 %v1854_v46 }
 0x1dd   :  { %2211 = vpow2.f32 %v1855_v47 }
 0x1e8   :  { %v2210_v48 = vpop.eup %2209 }
 0x1e9   :  { %v550_v50 = vadd.f32 1.0, %v2210_v48 }
 0x1ea   :  { %v2212_v49 = vpop.eup %2211 }
 0x1eb   :  { %v551_v51 = vadd.f32 1.0, %v2212_v49  ;;  %2213 = vrcp.f32 %v550_v50 }
 0x1ed   :  { %2215 = vrcp.f32 %v551_v51 }
 0x1f8   :  { %v2214_v52 = vpop.eup %2213 }
 0x1f9   :  { %v583_v1 = vsub.f32 1.0, %v2214_v52  ;;  %v595_v12 = vmul.f32 0.0, %v2214_v52 }
 0x1fa   :  { %v2216_v55 = vpop.eup %2215 }
 0x1fb   :  { %v584_v2 = vsub.f32 1.0, %v2216_v55  ;;  %v596_v5 = vmul.f32 0.0, %v2216_v55 }
 0x24b   :  { %v564_v53 = vpop.permute.xlu1 %563 }
 0x24c   :  { %v569_v54 = vmul.f32 %v2214_v52, %v564_v53 }
 0x24d   :  { %v566_v56 = vpop.permute.xlu0 %565 }
 0x24e   :  { %v570_v57 = vmul.f32 %v2216_v55, %v566_v56  ;;  %573 = vrot.lane.b32.xlu0 %v569_v54, %s2343_s22 }
 0x250   :  { %575 = vrot.lane.b32.xlu1 %v570_v57, %s2343_s22 }
 0x2c0   :  { %v574_v58 = vpop.permute.xlu0 %573 }
 0x2c1   :  { %v579_v59 = vadd.f32 %v574_v58, %v2674_v41 }
 0x2c2   :  { %v576_v60 = vpop.permute.xlu1 %575 }
 0x2c3   :  { %2217 = vtanh.f32 %v579_v59  ;;  %v580_v61 = vadd.f32 %v576_v60, %v2676_v43 }
 0x2c5   :  { %2219 = vtanh.f32 %v580_v61 }
 0x2d0   :  { %v2218_v62 = vpop.eup %2217 }
 0x2d1   :  { %587 = vrot.lane.b32.xlu0 %v2218_v62, %s2344_s25 }
 0x2d2   :  { %v2220_v63 = vpop.eup %2219 }
 0x2d3   :  { %589 = vrot.lane.b32.xlu1 %v2220_v63, %s2344_s25 }
 0x343   :  { %v588_v0 = vpop.permute.xlu0 %587 }
 0x344   :  { %v593_v4 = vmul.f32 %v588_v0, %v583_v1 }
 0x345   :  { %v590_v3 = vpop.permute.xlu1 %589 }
 0x346   :  { %v594_v6 = vmul.f32 %v590_v3, %v584_v2  ;;  %v597_v14 = vadd.f32 %v595_v12, %v593_v4 }
 0x348   :  { %v2686_v13 = vadd.f32 %v596_v5, %v594_v6  ;;  %v731_v51 = vrot.slane %v597_v14, 7 }
 0x34a   :  { %v601_v15 = vrot.slane %v2686_v13, 7 }
 0x34c   :  { %v603_v16 = vsel %vm602_vm8, %v601_v15, %v597_v14 }
 0x34d   :  { %604 = vrot.lane.b32.xlu1 %v603_v16, %s2344_s25 }
 0x3bf   :  { %v605_v17 = vpop.permute.xlu1 %604 }
 0x3c0   :  { %2114 = vmatmul.mubr.msk.f32.vlgmr.msra.gmra.mxu1 %vm377_vm7, %v605_v17 }
 0x3c1   :  { %2117 = vmatpush3.msra.mxu1 %v2599_v8  ;;  %2124 = vmatprep.mubr.msk.f32.mxu1 %vm2342_vm6, %v2341_v7 }
 0x3c2   :  { %2118 = vmatprep.subr.mxu1 %v2341_v7 }
 0x3c3   :  { %2119 = vmatpush3.msra.mxu1 %v2606_v9 }
 0x3c4   :  { %2120 = vmatprep.subr.mxu1 %v2341_v7 }
 0x3c5   :  { %2121 = vmatpush3.msra.mxu1 %v2613_v10 }
 0x3c6   :  { %2122 = vmatprep.subr.mxu1 %v2341_v7 }
 0x3c7   :  { %2123 = vmatpush3.msra.mxu1 %v2620_v11 }
 0x3c8   :  { %2138 = vmatprep.subr.mxu1 %v2341_v7 }
 0x480   :  { %v674_v18 = vpop.f32.mrf.mxu1 }
 0x481   :  { %v696_v19 = vadd.f32 %v674_v18, %v2662_v33  ;;  %v679_v22 = vrot.slane %v674_v18, 7  ;;  %v683_v24 = vadd.f32 %v674_v18, %v2676_v43 }
 0x482   :  { %v2115_v20 = vpop.f32.mrf.mxu1 }
 0x483   :  { %701 = vrot.lane.b32.xlu1 %v696_v19, %s2343_s22  ;;  %v698_v21 = vrot.slane %v696_v19, 7  ;;  %v682_v25 = vadd.f32 %v679_v22, %v2674_v41  ;;  %v1858_v26 = vmul.f32 -1.442695, %v683_v24 }
 0x485   :  { %699 = vrot.lane.b32.xlu0 %v698_v21, %s2343_s22  ;;  %v1857_v27 = vmul.f32 -1.442695, %v682_v25  ;;  %2221 = vpow2.f32 %v1858_v26 }
 0x487   :  { %2223 = vpow2.f32 %v1857_v27 }
 0x492   :  { %v2222_v28 = vpop.eup %2221 }
 0x493   :  { %v691_v31 = vadd.f32 1.0, %v2222_v28 }
 0x494   :  { %v2224_v29 = vpop.eup %2223 }
 0x495   :  { %v690_v34 = vadd.f32 1.0, %v2224_v29  ;;  %2225 = vrcp.f32 %v691_v31 }
 0x497   :  { %2227 = vrcp.f32 %v690_v34 }
 0x4a2   :  { %v2226_v35 = vpop.eup %2225 }
 0x4a3   :  { %v720_v52 = vsub.f32 1.0, %v2226_v35  ;;  %v735_v58 = vmul.f32 %v2226_v35, %v601_v15 }
 0x4a4   :  { %v2228_v38 = vpop.eup %2227 }
 0x4a5   :  { %v719_v53 = vsub.f32 1.0, %v2228_v38  ;;  %v734_v56 = vmul.f32 %v2228_v38, %v731_v51 }
 0x4f5   :  { %v702_v36 = vpop.permute.xlu1 %701 }
 0x4f6   :  { %v706_v37 = vmul.f32 %v2226_v35, %v702_v36 }
 0x4f7   :  { %v700_v40 = vpop.permute.xlu0 %699 }
 0x4f8   :  { %v705_v42 = vmul.f32 %v2228_v38, %v700_v40  ;;  %711 = vrot.lane.b32.xlu1 %v706_v37, %s2343_s22 }
 0x4fa   :  { %709 = vrot.lane.b32.xlu0 %v705_v42, %s2343_s22 }
 0x56a   :  { %v712_v44 = vpop.permute.xlu1 %711 }
 0x56b   :  { %v716_v45 = vadd.f32 %v712_v44, %v2676_v43 }
 0x56c   :  { %v710_v46 = vpop.permute.xlu0 %709 }
 0x56d   :  { %2229 = vtanh.f32 %v716_v45  ;;  %v715_v47 = vadd.f32 %v710_v46, %v2674_v41 }
 0x56f   :  { %2231 = vtanh.f32 %v715_v47 }
 0x57a   :  { %v2230_v48 = vpop.eup %2229 }
 0x57b   :  { %725 = vrot.lane.b32.xlu1 %v2230_v48, %s2344_s25 }
 0x57c   :  { %v2232_v49 = vpop.eup %2231 }
 0x57d   :  { %723 = vrot.lane.b32.xlu0 %v2232_v49, %s2344_s25 }
 0x5ed   :  { %v726_v50 = vpop.permute.xlu1 %725 }
 0x5ee   :  { %v730_v55 = vmul.f32 %v726_v50, %v720_v52 }
 0x5ef   :  { %v724_v54 = vpop.permute.xlu0 %723 }
 0x5f0   :  { %v729_v57 = vmul.f32 %v724_v54, %v719_v53  ;;  %v737_v60 = vadd.f32 %v735_v58, %v730_v55 }
 0x5f2   :  { %v2713_v59 = vadd.f32 %v734_v56, %v729_v57  ;;  %v872_v36 = vrot.slane %v737_v60, 7 }
 0x5f4   :  { %v740_v61 = vrot.slane %v2713_v59, 1  ;;  %v871_v38 = vrot.slane %v2713_v59, 7 }
 0x5f6   :  { %v741_v62 = vsel %vm602_vm8, %v737_v60, %v740_v61 }
 0x5f7   :  { %742 = vrot.lane.b32.xlu0 %v741_v62, %s2344_s25 }
 0x669   :  { %v743_v63 = vpop.permute.xlu0 %742 }
 0x66a   :  { %2125 = vmatmul.mubr.msk.f32.vlgmr.msra.gmra.mxu1 %vm377_vm7, %v743_v63 }
 0x66b   :  { %2139 = vmatpush3.msra.mxu1 %v2599_v8  ;;  %2146 = vmatprep.mubr.msk.f32.mxu1 %vm2342_vm6, %v2341_v7 }
 0x66c   :  { %2140 = vmatprep.subr.mxu1 %v2341_v7 }
 0x66d   :  { %2141 = vmatpush3.msra.mxu1 %v2606_v9 }
 0x66e   :  { %2142 = vmatprep.subr.mxu1 %v2341_v7 }
 0x66f   :  { %2143 = vmatpush3.msra.mxu1 %v2613_v10 }
 0x670   :  { %2144 = vmatprep.subr.mxu1 %v2341_v7 }
 0x671   :  { %2145 = vmatpush3.msra.mxu1 %v2620_v11 }
 0x672   :  { %2160 = vmatprep.subr.mxu1 %v2341_v7 }
 0x72a   :  { %v812_v0 = vpop.f32.mrf.mxu1 }
 0x72b   :  { %v835_v1 = vadd.f32 %v812_v0, %v2662_v33  ;;  %v817_v5 = vrot.slane %v812_v0, 6  ;;  %v818_v6 = vrot.slane %v812_v0, 7 }
 0x72c   :  { %v2126_v2 = vpop.f32.mrf.mxu1 }
 0x72d   :  { %v838_v3 = vrot.slane %v835_v1, 7  ;;  %v837_v4 = vrot.slane %v835_v1, 6  ;;  %v821_v12 = vadd.f32 %v817_v5, %v2674_v41  ;;  %v822_v13 = vadd.f32 %v818_v6, %v2676_v43 }
 0x72f   :  { %841 = vrot.lane.b32.xlu0 %v838_v3, %s2343_s22  ;;  %839 = vrot.lane.b32.xlu1 %v837_v4, %s2343_s22  ;;  %v1860_v14 = vmul.f32 -1.442695, %v821_v12  ;;  %v1861_v15 = vmul.f32 -1.442695, %v822_v13 }
 0x731   :  { %2233 = vpow2.f32 %v1860_v14 }
 0x732   :  { %2235 = vpow2.f32 %v1861_v15 }
 0x73e   :  { %v2234_v16 = vpop.eup %2233 }
 0x73f   :  { %v2236_v17 = vpop.eup %2235  ;;  %v829_v18 = vadd.f32 1.0, %v2234_v16 }
 0x740   :  { %v830_v19 = vadd.f32 1.0, %v2236_v17 }
 0x741   :  { %2237 = vrcp.f32 %v829_v18 }
 0x742   :  { %2239 = vrcp.f32 %v830_v19 }
 0x74e   :  { %v2238_v20 = vpop.eup %2237 }
 0x74f   :  { %v2240_v21 = vpop.eup %2239  ;;  %v859_v42 = vsub.f32 1.0, %v2238_v20  ;;  %v875_v47 = vmul.f32 %v2238_v20, %v871_v38 }
 0x750   :  { %v860_v37 = vsub.f32 1.0, %v2240_v21  ;;  %v876_v44 = vmul.f32 %v2240_v21, %v872_v36 }
 0x7a1   :  { %v842_v22 = vpop.permute.xlu0 %841  ;;  %v840_v24 = vpop.permute.xlu1 %839 }
 0x7a2   :  { %v846_v25 = vmul.f32 %v2240_v21, %v842_v22  ;;  %v845_v26 = vmul.f32 %v2238_v20, %v840_v24 }
 0x7a4   :  { %851 = vrot.lane.b32.xlu0 %v846_v25, %s2343_s22  ;;  %849 = vrot.lane.b32.xlu1 %v845_v26, %s2343_s22 }
 0x816   :  { %v852_v27 = vpop.permute.xlu0 %851  ;;  %v850_v28 = vpop.permute.xlu1 %849 }
 0x817   :  { %v856_v29 = vadd.f32 %v852_v27, %v2676_v43  ;;  %v855_v31 = vadd.f32 %v850_v28, %v2674_v41 }
 0x819   :  { %2241 = vtanh.f32 %v856_v29 }
 0x81a   :  { %2243 = vtanh.f32 %v855_v31 }
 0x826   :  { %v2242_v34 = vpop.eup %2241 }
 0x827   :  { %v2244_v35 = vpop.eup %2243  ;;  %865 = vrot.lane.b32.xlu0 %v2242_v34, %s2344_s25 }
 0x828   :  { %863 = vrot.lane.b32.xlu1 %v2244_v35, %s2344_s25 }
 0x899   :  { %v866_v40 = vpop.permute.xlu0 %865 }
 0x89a   :  { %v870_v45 = vmul.f32 %v866_v40, %v860_v37  ;;  %v864_v46 = vpop.permute.xlu1 %863 }
 0x89b   :  { %v869_v48 = vmul.f32 %v864_v46, %v859_v42 }
 0x89c   :  { %v878_v49 = vadd.f32 %v876_v44, %v870_v45 }
 0x89d   :  { %v2741_v50 = vadd.f32 %v875_v47, %v869_v48 }
 0x89e   :  { %v882_v51 = vrot.slane %v878_v49, 1  ;;  %v1014_v24 = vrot.slane %v878_v49, 7 }
 0x89f   :  { %v881_v52 = vrot.slane %v2741_v50, 2  ;;  %v1013_v26 = vrot.slane %v2741_v50, 7 }
 0x8a1   :  { %v883_v53 = vsel %vm602_vm8, %v882_v51, %v881_v52 }
 0x8a2   :  { %884 = vrot.lane.b32.xlu1 %v883_v53, %s2344_s25 }
 0x914   :  { %v885_v54 = vpop.permute.xlu1 %884 }
 0x915   :  { %2136 = vmatmul.mubr.msk.f32.vlgmr.msra.gmra.mxu0 %vm377_vm7, %v885_v54 }
 0x916   :  { %2150 = vmatpush3.msra.mxu0 %v2599_v8  ;;  %2157 = vmatprep.mubr.msk.f32.mxu0 %vm2342_vm6, %v2341_v7 }
 0x917   :  { %2151 = vmatprep.subr.mxu0 %v2341_v7 }
 0x918   :  { %2152 = vmatpush3.msra.mxu0 %v2606_v9 }
 0x919   :  { %2153 = vmatprep.subr.mxu0 %v2341_v7 }
 0x91a   :  { %2154 = vmatpush3.msra.mxu0 %v2613_v10 }
 0x91b   :  { %2155 = vmatprep.subr.mxu0 %v2341_v7 }
 0x91c   :  { %2156 = vmatpush3.msra.mxu0 %v2620_v11 }
 0x91d   :  { %2171 = vmatprep.subr.mxu0 %v2341_v7 }
 0x9d5   :  { %v954_v55 = vpop.f32.mrf.mxu0 }
 0x9d6   :  { %v977_v56 = vadd.f32 %v954_v55, %v2662_v33  ;;  %v959_v60 = vrot.slane %v954_v55, 5  ;;  %v960_v61 = vrot.slane %v954_v55, 6 }
 0x9d7   :  { %v2137_v57 = vpop.f32.mrf.mxu0 }
 0x9d8   :  { %v980_v58 = vrot.slane %v977_v56, 6  ;;  %v979_v59 = vrot.slane %v977_v56, 5  ;;  %v963_v62 = vadd.f32 %v959_v60, %v2674_v41  ;;  %v964_v63 = vadd.f32 %v960_v61, %v2676_v43 }
 0x9da   :  { %983 = vrot.lane.b32.xlu1 %v980_v58, %s2343_s22  ;;  %981 = vrot.lane.b32.xlu0 %v979_v59, %s2343_s22  ;;  %v1863_v0 = vmul.f32 -1.442695, %v963_v62  ;;  %v1864_v1 = vmul.f32 -1.442695, %v964_v63 }
 0x9dc   :  { %2245 = vpow2.f32 %v1863_v0 }
 0x9dd   :  { %2247 = vpow2.f32 %v1864_v1 }
 0x9e9   :  { %v2246_v2 = vpop.eup %2245 }
 0x9ea   :  { %v2248_v3 = vpop.eup %2247  ;;  %v971_v4 = vadd.f32 1.0, %v2246_v2 }
 0x9eb   :  { %v972_v5 = vadd.f32 1.0, %v2248_v3 }
 0x9ec   :  { %2249 = vrcp.f32 %v971_v4 }
 0x9ed   :  { %2251 = vrcp.f32 %v972_v5 }
 0x9f9   :  { %v2250_v6 = vpop.eup %2249 }
 0x9fa   :  { %v2252_v12 = vpop.eup %2251  ;;  %v1001_v28 = vsub.f32 1.0, %v2250_v6  ;;  %v1017_v35 = vmul.f32 %v2250_v6, %v1013_v26 }
 0x9fb   :  { %v1002_v25 = vsub.f32 1.0, %v2252_v12  ;;  %v1018_v29 = vmul.f32 %v2252_v12, %v1014_v24 }
 0xa4c   :  { %v984_v13 = vpop.permute.xlu1 %983  ;;  %v982_v14 = vpop.permute.xlu0 %981 }
 0xa4d   :  { %v988_v15 = vmul.f32 %v2252_v12, %v984_v13  ;;  %v987_v16 = vmul.f32 %v2250_v6, %v982_v14 }
 0xa4f   :  { %993 = vrot.lane.b32.xlu1 %v988_v15, %s2343_s22  ;;  %991 = vrot.lane.b32.xlu0 %v987_v16, %s2343_s22 }
 0xac1   :  { %v994_v17 = vpop.permute.xlu1 %993  ;;  %v992_v18 = vpop.permute.xlu0 %991 }
 0xac2   :  { %v998_v19 = vadd.f32 %v994_v17, %v2676_v43  ;;  %v997_v20 = vadd.f32 %v992_v18, %v2674_v41 }
 0xac4   :  { %2253 = vtanh.f32 %v998_v19 }
 0xac5   :  { %2255 = vtanh.f32 %v997_v20 }
 0xad1   :  { %v2254_v21 = vpop.eup %2253 }
 0xad2   :  { %v2256_v22 = vpop.eup %2255  ;;  %1007 = vrot.lane.b32.xlu1 %v2254_v21, %s2344_s25 }
 0xad3   :  { %1005 = vrot.lane.b32.xlu0 %v2256_v22, %s2344_s25 }
 0xb44   :  { %v1008_v27 = vpop.permute.xlu1 %1007 }
 0xb45   :  { %v1012_v31 = vmul.f32 %v1008_v27, %v1002_v25  ;;  %v1006_v34 = vpop.permute.xlu0 %1005 }
 0xb46   :  { %v1011_v36 = vmul.f32 %v1006_v34, %v1001_v28 }
 0xb47   :  { %v1020_v37 = vadd.f32 %v1018_v29, %v1012_v31 }
 0xb48   :  { %v2769_v38 = vadd.f32 %v1017_v35, %v1011_v36 }
 0xb49   :  { %v1024_v40 = vrot.slane %v1020_v37, 2  ;;  %v1156_v14 = vrot.slane %v1020_v37, 7 }
 0xb4a   :  { %v1023_v42 = vrot.slane %v2769_v38, 3  ;;  %v1155_v16 = vrot.slane %v2769_v38, 7 }
 0xb4c   :  { %v1025_v44 = vsel %vm602_vm8, %v1024_v40, %v1023_v42 }
 0xb4d   :  { %1026 = vrot.lane.b32.xlu0 %v1025_v44, %s2344_s25 }
 0xbbf   :  { %v1027_v45 = vpop.permute.xlu0 %1026 }
 0xbc0   :  { %2147 = vmatmul.mubr.msk.f32.vlgmr.msra.gmra.mxu1 %vm377_vm7, %v1027_v45 }
 0xbc1   :  { %2161 = vmatpush3.msra.mxu1 %v2599_v8  ;;  %2168 = vmatprep.mubr.msk.f32.mxu1 %vm2342_vm6, %v2341_v7 }
 0xbc2   :  { %2162 = vmatprep.subr.mxu1 %v2341_v7 }
 0xbc3   :  { %2163 = vmatpush3.msra.mxu1 %v2606_v9 }
 0xbc4   :  { %2164 = vmatprep.subr.mxu1 %v2341_v7 }
 0xbc5   :  { %2165 = vmatpush3.msra.mxu1 %v2613_v10 }
 0xbc6   :  { %2166 = vmatprep.subr.mxu1 %v2341_v7 }
 0xbc7   :  { %2167 = vmatpush3.msra.mxu1 %v2620_v11 }
 0xbc8   :  { %2182 = vmatprep.subr.mxu1 %v2341_v7 }
 0xc80   :  { %v1096_v46 = vpop.f32.mrf.mxu1 }
 0xc81   :  { %v1119_v47 = vadd.f32 %v1096_v46, %v2662_v33  ;;  %v1101_v51 = vrot.slane %v1096_v46, 4  ;;  %v1102_v52 = vrot.slane %v1096_v46, 5 }
 0xc82   :  { %v2148_v48 = vpop.f32.mrf.mxu1 }
 0xc83   :  { %v1122_v49 = vrot.slane %v1119_v47, 5  ;;  %v1121_v50 = vrot.slane %v1119_v47, 4  ;;  %v1105_v53 = vadd.f32 %v1101_v51, %v2674_v41  ;;  %v1106_v54 = vadd.f32 %v1102_v52, %v2676_v43 }
 0xc85   :  { %1125 = vrot.lane.b32.xlu0 %v1122_v49, %s2343_s22  ;;  %1123 = vrot.lane.b32.xlu1 %v1121_v50, %s2343_s22  ;;  %v1866_v55 = vmul.f32 -1.442695, %v1105_v53  ;;  %v1867_v56 = vmul.f32 -1.442695, %v1106_v54 }
 0xc87   :  { %2257 = vpow2.f32 %v1866_v55 }
 0xc88   :  { %2259 = vpow2.f32 %v1867_v56 }
 0xc94   :  { %v2258_v57 = vpop.eup %2257 }
 0xc95   :  { %v2260_v58 = vpop.eup %2259  ;;  %v1113_v59 = vadd.f32 1.0, %v2258_v57 }
 0xc96   :  { %v1114_v60 = vadd.f32 1.0, %v2260_v58 }
 0xc97   :  { %2261 = vrcp.f32 %v1113_v59 }
 0xc98   :  { %2263 = vrcp.f32 %v1114_v60 }
 0xca4   :  { %v2262_v61 = vpop.eup %2261 }
 0xca5   :  { %v2264_v62 = vpop.eup %2263  ;;  %v1143_v18 = vsub.f32 1.0, %v2262_v61  ;;  %v1159_v22 = vmul.f32 %v2262_v61, %v1155_v16 }
 0xca6   :  { %v1144_v15 = vsub.f32 1.0, %v2264_v62  ;;  %v1160_v19 = vmul.f32 %v2264_v62, %v1156_v14 }
 0xcf7   :  { %v1126_v63 = vpop.permute.xlu0 %1125  ;;  %v1124_v0 = vpop.permute.xlu1 %1123 }
 0xcf8   :  { %v1130_v1 = vmul.f32 %v2264_v62, %v1126_v63  ;;  %v1129_v2 = vmul.f32 %v2262_v61, %v1124_v0 }
 0xcfa   :  { %1135 = vrot.lane.b32.xlu0 %v1130_v1, %s2343_s22  ;;  %1133 = vrot.lane.b32.xlu1 %v1129_v2, %s2343_s22 }
 0xd6c   :  { %v1136_v3 = vpop.permute.xlu0 %1135  ;;  %v1134_v4 = vpop.permute.xlu1 %1133 }
 0xd6d   :  { %v1140_v5 = vadd.f32 %v1136_v3, %v2676_v43  ;;  %v1139_v6 = vadd.f32 %v1134_v4, %v2674_v41 }
 0xd6f   :  { %2265 = vtanh.f32 %v1140_v5 }
 0xd70   :  { %2267 = vtanh.f32 %v1139_v6 }
 0xd7c   :  { %v2266_v12 = vpop.eup %2265 }
 0xd7d   :  { %v2268_v13 = vpop.eup %2267  ;;  %1149 = vrot.lane.b32.xlu0 %v2266_v12, %s2344_s25 }
 0xd7e   :  { %1147 = vrot.lane.b32.xlu1 %v2268_v13, %s2344_s25 }
 0xdef   :  { %v1150_v17 = vpop.permute.xlu0 %1149 }
 0xdf0   :  { %v1154_v20 = vmul.f32 %v1150_v17, %v1144_v15  ;;  %v1148_v21 = vpop.permute.xlu1 %1147 }
 0xdf1   :  { %v1153_v24 = vmul.f32 %v1148_v21, %v1143_v18 }
 0xdf2   :  { %v1162_v25 = vadd.f32 %v1160_v19, %v1154_v20 }
 0xdf3   :  { %v2797_v26 = vadd.f32 %v1159_v22, %v1153_v24 }
 0xdf4   :  { %v1166_v27 = vrot.slane %v1162_v25, 3  ;;  %v1298_v60 = vrot.slane %v1162_v25, 7 }
 0xdf5   :  { %v1165_v28 = vrot.slane %v2797_v26, 4  ;;  %v1297_v62 = vrot.slane %v2797_v26, 7 }
 0xdf7   :  { %v1167_v29 = vsel %vm602_vm8, %v1166_v27, %v1165_v28 }
 0xdf8   :  { %1168 = vrot.lane.b32.xlu1 %v1167_v29, %s2344_s25 }
 0xe6a   :  { %v1169_v31 = vpop.permute.xlu1 %1168 }
 0xe6b   :  { %2158 = vmatmul.mubr.msk.f32.vlgmr.msra.gmra.mxu0 %vm377_vm7, %v1169_v31 }
 0xe6c   :  { %2172 = vmatpush3.msra.mxu0 %v2599_v8  ;;  %2179 = vmatprep.mubr.msk.f32.mxu0 %vm2342_vm6, %v2341_v7 }
 0xe6d   :  { %2173 = vmatprep.subr.mxu0 %v2341_v7 }
 0xe6e   :  { %2174 = vmatpush3.msra.mxu0 %v2606_v9 }
 0xe6f   :  { %2175 = vmatprep.subr.mxu0 %v2341_v7 }
 0xe70   :  { %2176 = vmatpush3.msra.mxu0 %v2613_v10 }
 0xe71   :  { %2177 = vmatprep.subr.mxu0 %v2341_v7 }
 0xe72   :  { %2178 = vmatpush3.msra.mxu0 %v2620_v11 }
 0xe73   :  { %2193 = vmatprep.subr.mxu0 %v2341_v7 }
 0xf2b   :  { %v1238_v34 = vpop.f32.mrf.mxu0 }
 0xf2c   :  { %v1261_v8 = vadd.f32 %v1238_v34, %v2662_v33  ;;  %v1243_v9 = vrot.slane %v1238_v34, 3  ;;  %v1244_v38 = vrot.slane %v1238_v34, 4 }
 0xf2d   :  { %v2159_v35 = vpop.f32.mrf.mxu0 }
 0xf2e   :  { %v1264_v36 = vrot.slane %v1261_v8, 4  ;;  %v1263_v37 = vrot.slane %v1261_v8, 3  ;;  %v1247_v10 = vadd.f32 %v1243_v9, %v2674_v41  ;;  %v1248_v40 = vadd.f32 %v1244_v38, %v2676_v43 }
 0xf30   :  { %1267 = vrot.lane.b32.xlu1 %v1264_v36, %s2343_s22  ;;  %1265 = vrot.lane.b32.xlu0 %v1263_v37, %s2343_s22  ;;  %v1869_v42 = vmul.f32 -1.442695, %v1247_v10  ;;  %v1870_v11 = vmul.f32 -1.442695, %v1248_v40 }
 0xf32   :  { %2269 = vpow2.f32 %v1869_v42 }
 0xf33   :  { %2271 = vpow2.f32 %v1870_v11 }
 0xf3f   :  { %v2270_v44 = vpop.eup %2269 }
 0xf40   :  { %v2272_v45 = vpop.eup %2271  ;;  %v1255_v46 = vadd.f32 1.0, %v2270_v44 }
 0xf41   :  { %v1256_v47 = vadd.f32 1.0, %v2272_v45 }
 0xf42   :  { %2273 = vrcp.f32 %v1255_v46 }
 0xf43   :  { %2275 = vrcp.f32 %v1256_v47 }
 0xf4f   :  { %v2274_v48 = vpop.eup %2273 }
 0xf50   :  { %v2276_v49 = vpop.eup %2275  ;;  %v1285_v0 = vsub.f32 1.0, %v2274_v48  ;;  %v1301_v4 = vmul.f32 %v2274_v48, %v1297_v62 }
 0xf51   :  { %v1286_v61 = vsub.f32 1.0, %v2276_v49  ;;  %v1302_v1 = vmul.f32 %v2276_v49, %v1298_v60 }
 0xfa2   :  { %v1268_v50 = vpop.permute.xlu1 %1267  ;;  %v1266_v51 = vpop.permute.xlu0 %1265 }
 0xfa3   :  { %v1272_v52 = vmul.f32 %v2276_v49, %v1268_v50  ;;  %v1271_v53 = vmul.f32 %v2274_v48, %v1266_v51 }
 0xfa5   :  { %1277 = vrot.lane.b32.xlu1 %v1272_v52, %s2343_s22  ;;  %1275 = vrot.lane.b32.xlu0 %v1271_v53, %s2343_s22 }
0x1017   :  { %v1278_v54 = vpop.permute.xlu1 %1277  ;;  %v1276_v55 = vpop.permute.xlu0 %1275 }
0x1018   :  { %v1282_v56 = vadd.f32 %v1278_v54, %v2676_v43  ;;  %v1281_v57 = vadd.f32 %v1276_v55, %v2674_v41 }
0x101a   :  { %2277 = vtanh.f32 %v1282_v56 }
0x101b   :  { %2279 = vtanh.f32 %v1281_v57 }
0x1027   :  { %v2278_v58 = vpop.eup %2277 }
0x1028   :  { %v2280_v59 = vpop.eup %2279  ;;  %1291 = vrot.lane.b32.xlu1 %v2278_v58, %s2344_s25 }
0x1029   :  { %1289 = vrot.lane.b32.xlu0 %v2280_v59, %s2344_s25 }
0x109a   :  { %v1292_v63 = vpop.permute.xlu1 %1291 }
0x109b   :  { %v1296_v2 = vmul.f32 %v1292_v63, %v1286_v61  ;;  %v1290_v3 = vpop.permute.xlu0 %1289 }
0x109c   :  { %v1295_v5 = vmul.f32 %v1290_v3, %v1285_v0 }
0x109d   :  { %v1304_v6 = vadd.f32 %v1302_v1, %v1296_v2 }
0x109e   :  { %v1303_v12 = vadd.f32 %v1301_v4, %v1295_v5  ;;  %v373_v4 = vsub.s32 1, %v2447_v23 }
0x109f   :  { %v1308_v13 = vrot.slane %v1304_v6, 4  ;;  %v1440_v47 = vrot.slane %v1304_v6, 7 }
0x10a0   :  { %v1307_v14 = vrot.slane %v1303_v12, 5  ;;  %v1439_v49 = vrot.slane %v1303_v12, 7  ;;  %v374_v12 = vrot.slane %v2671_v39, %v373_v4 }
0x10a2   :  { %v1309_v15 = vsel %vm602_vm8, %v1308_v13, %v1307_v14 }
0x10a3   :  { %1310 = vrot.lane.b32.xlu0 %v1309_v15, %s2344_s25  ;;  %v453_v15 = vadd.f32 %v2658_v30, %v374_v12 }
0x1115   :  { %v1311_v16 = vpop.permute.xlu0 %1310 }
0x1116   :  { %2169 = vmatmul.mubr.msk.f32.vlgmr.msra.gmra.mxu1 %vm377_vm7, %v1311_v16 }
0x1117   :  { %2190 = vmatprep.mubr.msk.f32.mxu1 %vm2342_vm6, %v2341_v7 }
0x11d6   :  { %v1380_v17 = vpop.f32.mrf.mxu1 }
0x11d7   :  { %v1403_v18 = vadd.f32 %v1380_v17, %v2662_v33  ;;  %v1385_v22 = vrot.slane %v1380_v17, 2  ;;  %v1386_v24 = vrot.slane %v1380_v17, 3 }
0x11d8   :  { %v2170_v19 = vpop.f32.mrf.mxu1 }
0x11d9   :  { %v1406_v20 = vrot.slane %v1403_v18, 3  ;;  %v1405_v21 = vrot.slane %v1403_v18, 2  ;;  %v1389_v25 = vadd.f32 %v1385_v22, %v2674_v41  ;;  %v1390_v26 = vadd.f32 %v1386_v24, %v2676_v43 }
0x11da   :  { %v1877_v18 = vmul.f32 -1.442695, %v453_v15 }
0x11db   :  { %1409 = vrot.lane.b32.xlu0 %v1406_v20, %s2343_s22  ;;  %1407 = vrot.lane.b32.xlu1 %v1405_v21, %s2343_s22  ;;  %v1872_v27 = vmul.f32 -1.442695, %v1389_v25  ;;  %v1873_v28 = vmul.f32 -1.442695, %v1390_v26 }
0x11dd   :  { %2281 = vpow2.f32 %v1872_v27 }
0x11de   :  { %2283 = vpow2.f32 %v1873_v28 }
0x11ea   :  { %v2282_v29 = vpop.eup %2281 }
0x11eb   :  { %v2284_v31 = vpop.eup %2283  ;;  %v1397_v34 = vadd.f32 1.0, %v2282_v29 }
0x11ec   :  { %v1398_v8 = vadd.f32 1.0, %v2284_v31 }
0x11ed   :  { %2285 = vrcp.f32 %v1397_v34 }
0x11ee   :  { %2287 = vrcp.f32 %v1398_v8 }
0x11fa   :  { %v2286_v35 = vpop.eup %2285 }
0x11fb   :  { %v2288_v36 = vpop.eup %2287  ;;  %v1427_v51 = vsub.f32 1.0, %v2286_v35  ;;  %v1443_v55 = vmul.f32 %v2286_v35, %v1439_v49  ;;  %v1628_v49 = vld [vmem:[%s2940_s4 + $0x8] sm:$0xff] }
0x11fc   :  { %v1428_v48 = vsub.f32 1.0, %v2288_v36  ;;  %v1444_v52 = vmul.f32 %v2288_v36, %v1440_v47  ;;  %v1634_v47 = vld [vmem:[%s2940_s4 + $0x38] sm:$0xff] }
0x11fd   :  { %2183 = vmatpush3.msra.mxu1 %v1634_v47 }
0x11fe   :  { %2184 = vmatprep.subr.mxu1 %v2341_v7 }
0x124d   :  { %v1410_v37 = vpop.permute.xlu0 %1409  ;;  %v1408_v9 = vpop.permute.xlu1 %1407 }
0x124e   :  { %v1414_v38 = vmul.f32 %v2288_v36, %v1410_v37  ;;  %v1413_v10 = vmul.f32 %v2286_v35, %v1408_v9  ;;  %v28_v35 = vld [vmem:[%s2941_s5 + $0x3] ss:$0 sm:$0xff] }
0x1250   :  { %1419 = vrot.lane.b32.xlu0 %v1414_v38, %s2343_s22  ;;  %1417 = vrot.lane.b32.xlu1 %v1413_v10, %s2343_s22 }
0x12c2   :  { %v1420_v40 = vpop.permute.xlu0 %1419  ;;  %v1418_v42 = vpop.permute.xlu1 %1417 }
0x12c3   :  { %v1424_v11 = vadd.f32 %v1420_v40, %v2676_v43  ;;  %v1423_v44 = vadd.f32 %v1418_v42, %v2674_v41 }
0x12c5   :  { %2289 = vtanh.f32 %v1424_v11 }
0x12c6   :  { %2291 = vtanh.f32 %v1423_v44 }
0x12d2   :  { %v2290_v45 = vpop.eup %2289 }
0x12d3   :  { %v2292_v46 = vpop.eup %2291  ;;  %1433 = vrot.lane.b32.xlu0 %v2290_v45, %s2344_s25 }
0x12d4   :  { %1431 = vrot.lane.b32.xlu1 %v2292_v46, %s2344_s25  ;;  %v1630_v46 = vld [vmem:[%s2940_s4 + $0x18] sm:$0xff] }
0x1345   :  { %v1434_v50 = vpop.permute.xlu0 %1433 }
0x1346   :  { %v1438_v53 = vmul.f32 %v1434_v50, %v1428_v48  ;;  %v1432_v54 = vpop.permute.xlu1 %1431  ;;  %v1633_v48 = vld [vmem:[%s2940_s4 + $0x30] sm:$0xff] }
0x1347   :  { %v1437_v56 = vmul.f32 %v1432_v54, %v1427_v51  ;;  %v1632_v51 = vld [vmem:[%s2940_s4 + $0x28] sm:$0xff]  ;;  %2185 = vmatpush3.msra.mxu1 %v1633_v48 }
0x1348   :  { %v2841_v57 = vadd.f32 %v1444_v52, %v1438_v53  ;;  %v1627_v52 = vld [vmem:[%s2940_s4] sm:$0xff]  ;;  %2186 = vmatprep.subr.mxu1 %v2341_v7 }
0x1349   :  { %v2843_v58 = vadd.f32 %v1443_v55, %v1437_v56  ;;  %2187 = vmatpush3.msra.mxu1 %v1632_v51  ;;  %v1631_v55 = vld [vmem:[%s2940_s4 + $0x20] sm:$0xff] }
0x134a   :  { %v1450_v59 = vrot.slane %v2841_v57, 5  ;;  %2188 = vmatprep.subr.mxu1 %v2341_v7  ;;  %v1582_v56 = vrot.slane %v2841_v57, 7 }
0x134b   :  { %v1449_v60 = vrot.slane %v2843_v58, 6  ;;  %2189 = vmatpush3.msra.mxu1 %v1631_v55 }
0x134d   :  { %v1451_v61 = vsel %vm602_vm8, %v1450_v59, %v1449_v60  ;;  %v1581_v60 = vrot.slane %v2843_v58, 7 }
0x134e   :  { %1452 = vrot.lane.b32.xlu1 %v1451_v61, %s2344_s25 }
0x13c0   :  { %v1453_v62 = vpop.permute.xlu1 %1452 }
0x13c1   :  { %2180 = vmatmul.mubr.msk.f32.vlgmr.msra.gmra.mxu0 %vm377_vm7, %v1453_v62 }
0x13c2   :  { %2201 = vmatprep.mubr.msk.f32.mxu0 %vm2342_vm6, %v2341_v7  ;;  %2194 = vmatpush3.msra.mxu0 %v1630_v46 }
0x13c3   :  { %2195 = vmatprep.subr.mxu0 %v2341_v7 }
0x1481   :  { %v1522_v63 = vpop.f32.mrf.mxu0 }
0x1482   :  { %v1545_v0 = vadd.f32 %v1522_v63, %v2662_v33  ;;  %v1527_v5 = vrot.slane %v1522_v63, 1  ;;  %v1528_v6 = vrot.slane %v1522_v63, 2  ;;  %v459_v33 = vadd.f32 %v2660_v32, %v374_v12 }
0x1483   :  { %v2181_v1 = vpop.f32.mrf.mxu0 }
0x1484   :  { %v1548_v2 = vrot.slane %v1545_v0, 2  ;;  %v1547_v3 = vrot.slane %v1545_v0, 1  ;;  %v1531_v13 = vadd.f32 %v1527_v5, %v2674_v41  ;;  %v1532_v14 = vadd.f32 %v1528_v6, %v2676_v43 }
0x1485   :  { %v1878_v19 = vmul.f32 -1.442695, %v459_v33 }
0x1486   :  { %1551 = vrot.lane.b32.xlu1 %v1548_v2, %s2343_s22  ;;  %1549 = vrot.lane.b32.xlu0 %v1547_v3, %s2343_s22  ;;  %v1875_v16 = vmul.f32 -1.442695, %v1531_v13  ;;  %v1876_v17 = vmul.f32 -1.442695, %v1532_v14 }
0x1488   :  { %2293 = vpow2.f32 %v1875_v16 }
0x1489   :  { %2295 = vpow2.f32 %v1876_v17 }
0x148a   :  { %2297 = vpow2.f32 %v1877_v18 }
0x148b   :  { %2299 = vpow2.f32 %v1878_v19 }
0x1495   :  { %v2294_v23 = vpop.eup %2293 }
0x1496   :  { %v2296_v20 = vpop.eup %2295  ;;  %v1539_v22 = vadd.f32 1.0, %v2294_v23 }
0x1497   :  { %v2298_v21 = vpop.eup %2297  ;;  %v1540_v24 = vadd.f32 1.0, %v2296_v20 }
0x1498   :  { %v2300_v39 = vpop.eup %2299  ;;  %v1595_v25 = vadd.f32 1.0, %v2298_v21  ;;  %2301 = vrcp.f32 %v1539_v22  ;;  %v29_v21 = vld [vmem:[%s2941_s5 + $0x4] ss:$0 sm:$0xff] }
0x1499   :  { %v1596_v26 = vadd.f32 1.0, %v2300_v39  ;;  %2303 = vrcp.f32 %v1540_v24 }
0x149a   :  { %2305 = vrcp.f32 %v1595_v25 }
0x149b   :  { %2307 = vrcp.f32 %v1596_v26 }
0x14a5   :  { %v2861_v30 = vpop.eup %2301 }
0x14a6   :  { %v2863_v32 = vpop.eup %2303  ;;  %v1569_v62 = vsub.f32 1.0, %v2861_v30 }
0x14a7   :  { %v2865_v29 = vpop.eup %2305  ;;  %v1570_v59 = vsub.f32 1.0, %v2863_v32  ;;  %v1586_v63 = vmul.f32 %v2863_v32, %v1582_v56 }
0x14a8   :  { %v2869_v8 = vpop.eup %2307  ;;  %v1601_v37 = vmul.f32 %v2865_v29, %v28_v35  ;;  %v1615_v57 = vsub.f32 1.0, %v2865_v29 }
0x14a9   :  { %v1602_v36 = vmul.f32 %v2869_v8, %v28_v35  ;;  %v1616_v4 = vsub.f32 1.0, %v2869_v8 }
0x14f8   :  { %v1552_v27 = vpop.permute.xlu1 %1551  ;;  %v1550_v28 = vpop.permute.xlu0 %1549 }
0x14f9   :  { %v1556_v31 = vmul.f32 %v2863_v32, %v1552_v27  ;;  %v1555_v34 = vmul.f32 %v2861_v30, %v1550_v28 }
0x14fb   :  { %1561 = vrot.lane.b32.xlu1 %v1556_v31, %s2343_s22  ;;  %1559 = vrot.lane.b32.xlu0 %v1555_v34, %s2343_s22 }
0x14ff   :  { %1607 = vrot.lane.b32.xlu1 %v1602_v36, %s2343_s22  ;;  %1605 = vrot.lane.b32.xlu0 %v1601_v37, %s2343_s22 }
0x156d   :  { %v1562_v9 = vpop.permute.xlu1 %1561  ;;  %v1560_v38 = vpop.permute.xlu0 %1559 }
0x156e   :  { %v1566_v10 = vadd.f32 %v1562_v9, %v2676_v43  ;;  %v1565_v40 = vadd.f32 %v1560_v38, %v2674_v41  ;;  %v1629_v41 = vld [vmem:[%s2940_s4 + $0x10] sm:$0xff] }
0x156f   :  { %2196 = vmatpush3.msra.mxu0 %v1629_v41 }
0x1570   :  { %2309 = vtanh.f32 %v1566_v10  ;;  %2197 = vmatprep.subr.mxu0 %v2341_v7 }
0x1571   :  { %2311 = vtanh.f32 %v1565_v40  ;;  %v1608_v42 = vpop.permute.xlu1 %1607  ;;  %v1606_v11 = vpop.permute.xlu0 %1605  ;;  %2198 = vmatpush3.msra.mxu0 %v1628_v49 }
0x1572   :  { %v1612_v44 = vadd.f32 %v1608_v42, %v459_v33  ;;  %v1611_v45 = vadd.f32 %v1606_v11, %v453_v15  ;;  %2199 = vmatprep.subr.mxu0 %v2341_v7  ;;  %v1585_v7 = vmul.f32 %v2861_v30, %v1581_v60 }
0x1573   :  { %2200 = vmatpush3.msra.mxu0 %v1627_v52 }
0x1574   :  { %2313 = vtanh.f32 %v1612_v44 }
0x1575   :  { %2315 = vtanh.f32 %v1611_v45 }
0x157d   :  { %v2310_v43 = vpop.eup %2309 }
0x157e   :  { %v2312_v50 = vpop.eup %2311  ;;  %1575 = vrot.lane.b32.xlu1 %v2310_v43, %s2344_s25 }
0x157f   :  { %1573 = vrot.lane.b32.xlu0 %v2312_v50, %s2344_s25 }
0x1581   :  { %v2314_v53 = vpop.eup %2313 }
0x1582   :  { %v2316_v54 = vpop.eup %2315  ;;  %1621 = vrot.lane.b32.xlu1 %v2314_v53, %s2344_s25 }
0x1583   :  { %1619 = vrot.lane.b32.xlu0 %v2316_v54, %s2344_s25 }
0x15f0   :  { %v1576_v61 = vpop.permute.xlu1 %1575 }
0x15f1   :  { %v1580_v0 = vmul.f32 %v1576_v61, %v1570_v59  ;;  %v1574_v1 = vpop.permute.xlu0 %1573 }
0x15f2   :  { %v1579_v2 = vmul.f32 %v1574_v1, %v1569_v62 }
0x15f3   :  { %v1588_v3 = vadd.f32 %v1586_v63, %v1580_v0 }
0x15f4   :  { %v1587_v5 = vadd.f32 %v1585_v7, %v1579_v2  ;;  %v1622_v6 = vpop.permute.xlu1 %1621 }
0x15f5   :  { %v1717_v12 = vrot.slane %v1588_v3, 6  ;;  %v1626_v13 = vmul.f32 %v1622_v6, %v1616_v4  ;;  %v1620_v58 = vpop.permute.xlu0 %1619 }
0x15f6   :  { %v1716_v14 = vrot.slane %v1587_v5, 7  ;;  %v1625_v15 = vmul.f32 %v1620_v58, %v1615_v57 }
0x15f7   :  { %v1638_v33 = vrot.slane %v1626_v13, 6 }
0x15f8   :  { %v1637_v16 = vrot.slane %v1625_v15, 7  ;;  %v1718_v17 = vsel %vm602_vm8, %v1717_v12, %v1716_v14 }
0x15f9   :  { %1719 = vrot.lane.b32.xlu1 %v1718_v17, %s2344_s25 }
0x15fa   :  { %v1639_v18 = vsel %vm602_vm8, %v1638_v33, %v1637_v16 }
0x15fb   :  { %1640 = vrot.lane.b32.xlu0 %v1639_v18, %s2344_s25 }
0x166b   :  { %v1720_v19 = vpop.permute.xlu1 %1719 }
0x166c   :  { %2202 = vmatmul.mubr.msk.f32.vlgmr.msra.gmra.mxu0 %vm377_vm7, %v1720_v19 }
0x166d   :  { %v1641_v23 = vpop.permute.xlu0 %1640 }
0x166e   :  { %2191 = vmatmul.mubr.msk.f32.vlgmr.msra.gmra.mxu1 %vm377_vm7, %v1641_v23 }
0x172c   :  { %v1789_v20 = vpop.f32.mrf.mxu0 }
0x172e   :  { %v1710_v39 = vpop.f32.mrf.mxu1  ;;  %v2203_v22 = vpop.f32.mrf.mxu0 }
0x172f   :  { %v1790_v24 = vadd.f32 %v1789_v20, %v1710_v39 }
0x1730   :  { %v2192_v25 = vpop.f32.mrf.mxu1 }
0x1731   :  { %v1793_v26 = vadd.f32 %v1790_v24, %v29_v21 }
0x1733   :  { %2317 = vtanh.f32 %v1793_v26 }
0x1740   :  { %v2318_v30 = vpop.eup %2317 }
0x1741   :  { %1796 = vst.msk [vmem:[#allocation2] sm:$0x3] %vm1795_vm9, %v2318_v30 }
0x1742   :  { %2330 = shalt.err (!%p2327_p4)
}
0x1743   :  { %1806 = dma.vmem_to_hbm [thread:$0]  %s1804_s20, 32, %s2942_s6, [#allocation3]  }
0x1744   :  { %2339 = dma.done.wait [#allocation3], 32  }
0x1745   :  { %2340 = vsyncadd [#allocation3], 4294967264 }
0x1746   :  { %1810 = vsyncpa [#allocation3], 1 }

</bundles_post_ra>
